<compile_context>
chip_gen: v7x
topology: tpu7x:2x2x1
jax: 0.10.0
libtpu: 0.0.40
codegen_flags: <defaults>
</compile_context>

<pallas_src>
import jax
import jax.numpy as jnp
from jax import lax
from jax.experimental import pallas as pl
from jax.experimental.pallas import tpu as pltpu

D_MODEL = 768  # nn.Linear(768, 768)


def _linear_kernel(x_ref, w_ref, b_ref, o_ref):
    """One M-tile of y = x @ W^T + b.

    x_ref: (tm, K)   activation rows
    w_ref: (N, K)    PyTorch Linear weight (out_features, in_features), resident
    b_ref: (1, N)    bias, resident
    o_ref: (tm, N)   output rows
    """
    y = lax.dot_general(
        x_ref[...],
        w_ref[...],
        dimension_numbers=(((1,), (1,)), ((), ())),  # contract K with K -> x @ W^T
        preferred_element_type=jnp.float32,
    )
    o_ref[...] = (y + b_ref[...]).astype(o_ref.dtype)


def citation_processor_forward(citations, weight, bias, *, tm=512):
    """Pallas equivalent of CitationProcessor.forward.

    citations: (B, S, D) float32
    weight:    (D, D)    float32  -- PyTorch Linear weight (out_features, in_features)
    bias:      (D,)      float32
    returns:   (B, S, D) float32
    """
    B, S, D = citations.shape
    assert D == D_MODEL
    K = D
    N = D
    M = B * S

    x = citations.reshape(M, K)
    b = bias.reshape(1, N)

    # Pick the M tile: cap at `tm`, but never exceed (padded) M; keep it a
    # multiple of 8 so the (tm, 768) blocks satisfy the (8, 128) tiling rule.
    tile_m = min(tm, max(8, ((M + 7) // 8) * 8))
    tile_m = ((tile_m + 7) // 8) * 8
    m_pad = ((M + tile_m - 1) // tile_m) * tile_m
    if m_pad != M:
        x = jnp.pad(x, ((0, m_pad - M), (0, 0)))

    grid = (m_pad // tile_m,)

    out = pl.pallas_call(
        _linear_kernel,
        out_shape=jax.ShapeDtypeStruct((m_pad, N), citations.dtype),
        grid_spec=pltpu.PrefetchScalarGridSpec(
            num_scalar_prefetch=0,
            grid=grid,
            in_specs=[
                pl.BlockSpec((tile_m, K), lambda i: (i, 0)),  # x rows, streamed
                pl.BlockSpec((N, K), lambda i: (0, 0)),       # weight, resident
                pl.BlockSpec((1, N), lambda i: (0, 0)),       # bias, resident
            ],
            out_specs=pl.BlockSpec((tile_m, N), lambda i: (i, 0)),
        ),
        compiler_params=pltpu.CompilerParams(
            dimension_semantics=("parallel",),  # M tiles shard across TCs (v7x)
        ),
        cost_estimate=pl.CostEstimate(
            flops=2 * m_pad * K * N,
            transcendentals=0,
            bytes_accessed=(m_pad * K + N * K + N + m_pad * N) * 4,
        ),
    )(x, weight, b)

    return out[:M].reshape(B, S, D)


if __name__ == "__main__":
    key = jax.random.PRNGKey(0)
    k_x, k_w, k_b = jax.random.split(key, 3)

    # Small shapes consistent with the module: batch=2, seq=8, hidden=768.
    B, S = 2, 8
    citations = jax.random.normal(k_x, (B, S, D_MODEL), dtype=jnp.float32)

    # Deterministic synthetic parameters (match nn.Linear(768, 768) shapes).
    weight = jax.random.normal(k_w, (D_MODEL, D_MODEL), dtype=jnp.float32) * 0.02
    bias = jax.random.normal(k_b, (D_MODEL,), dtype=jnp.float32) * 0.02

    out = citation_processor_forward(citations, weight, bias)
    out = jax.block_until_ready(out)

    # Reference check against plain JAX (same math as PyTorch Linear).
    ref = citations @ weight.T + bias
    assert out.shape == (B, S, D_MODEL)
    assert jnp.allclose(out, ref, atol=1e-3, rtol=1e-3)

    print("KERNEL_OK")
</pallas_src>

<mosaic_0001>
module attributes {stable_mosaic.version = 11 : i64} {
  func.func @_linear_kernel(%arg0: i32, %arg1: memref<16x768xf32, #tpu.memory_space<vmem>>, %arg2: memref<768x768xf32, #tpu.memory_space<vmem>>, %arg3: memref<1x768xf32, #tpu.memory_space<vmem>>, %arg4: memref<16x768xf32, #tpu.memory_space<vmem>>) attributes {dimension_semantics = [#tpu.dimension_semantics<parallel>], iteration_bounds = array<i64: 1>, scalar_prefetch = 0 : i64, scratch_operands = 0 : i64, tpu.core_type = #tpu.core_type<tc>, window_params = [{transform_indices = @transform_0, window_bounds = array<i64: 16, 768>}, {pipeline_mode = #tpu.pipeline_mode<synchronous>, transform_indices = @transform_1, window_bounds = array<i64: 768, 768>}, {pipeline_mode = #tpu.pipeline_mode<synchronous>, transform_indices = @transform_2, window_bounds = array<i64: 1, 768>}, {transform_indices = @transform_3, window_bounds = array<i64: 16, 768>}]} {
    %c0 = arith.constant 0 : index
    %c0_0 = arith.constant 0 : index
    %0 = vector.load %arg1[%c0, %c0_0] : memref<16x768xf32, #tpu.memory_space<vmem>>, vector<16x768xf32>
    %c0_1 = arith.constant 0 : index
    %c0_2 = arith.constant 0 : index
    %1 = vector.load %arg2[%c0_1, %c0_2] : memref<768x768xf32, #tpu.memory_space<vmem>>, vector<768x768xf32>
    %cst = arith.constant dense<0.000000e+00> : vector<16x768xf32>
    %2 = tpu.matmul %0, %1, %cst {dimension_numbers = #tpu.dot_dimension_numbers<[1], [1], [0], [0], [0, 0, 1, 0], [], []>} : vector<16x768xf32>, vector<768x768xf32>, vector<16x768xf32> -> vector<16x768xf32>
    %c0_3 = arith.constant 0 : index
    %c0_4 = arith.constant 0 : index
    %3 = vector.load %arg3[%c0_3, %c0_4] : memref<1x768xf32, #tpu.memory_space<vmem>>, vector<1x768xf32>
    %4 = vector.broadcast %3 : vector<1x768xf32> to vector<16x768xf32>
    %5 = arith.addf %2, %4 : vector<16x768xf32>
    %c0_5 = arith.constant 0 : index
    %c0_6 = arith.constant 0 : index
    %6 = vector.load %arg4[%c0_5, %c0_6] : memref<16x768xf32, #tpu.memory_space<vmem>>, vector<16x768xf32>
    tpu.vector_store %arg4[%c0_5, %c0_6], %5 {strides = array<i32>} : memref<16x768xf32, #tpu.memory_space<vmem>>, vector<16x768xf32>,
    return
  }
  func.func @transform_0(%arg0: i32) -> (i32, i32) {
    %c0_i32 = arith.constant 0 : i32
    %c0_i32_0 = arith.constant 0 : i32
    return %arg0, %c0_i32 : i32, i32
  }
  func.func @transform_1(%arg0: i32) -> (i32, i32) {
    %c0_i32 = arith.constant 0 : i32
    %c0_i32_0 = arith.constant 0 : i32
    %c0_i32_1 = arith.constant 0 : i32
    return %c0_i32, %c0_i32_0 : i32, i32
  }
  func.func @transform_2(%arg0: i32) -> (i32, i32) {
    %c0_i32 = arith.constant 0 : i32
    %c0_i32_0 = arith.constant 0 : i32
    %c0_i32_1 = arith.constant 0 : i32
    return %c0_i32, %c0_i32_0 : i32, i32
  }
  func.func @transform_3(%arg0: i32) -> (i32, i32) {
    %c0_i32 = arith.constant 0 : i32
    %c0_i32_0 = arith.constant 0 : i32
    return %arg0, %c0_i32 : i32, i32
  }
}

</mosaic_0001>

<bundles_post_ra>
// kernel: tpu_custom_call.1
= control target key start
LH: loop header
LB: loop body
LE: loop exit
PB: predicated region body
PF: predicated region fallthrough
CT: control target
= control target key end

     0   :  { %8 = vsyncpa [#allocation3], 0  ;;  %s2315_s0 = inlined_call_operand.hbm [shape: f32[16,768], index: 0, kind: input, shape index: {}]   ;;  %s2316_s1 = inlined_call_operand.hbm [shape: f32[768,768], index: 1, kind: input, shape index: {}]   ;;  %s2317_s2 = inlined_call_operand.hbm [shape: f32[1,768], index: 2, kind: input, shape index: {}]   ;;  %s2318_s3 = inlined_call_operand.hbm [shape: f32[16,768], index: 3, kind: output, shape index: {}]  }
   0x1   :  { %9 = vsyncpa [#allocation6], 0 }
   0x2   :  { %10 = vsyncpa [#allocation4], 0  ;;  %s2152_s12 = smov [#allocation5]   ;;  %s2153_s14 = smov [#allocation2]  }
   0x3   :  { %s28_s13 = sshll.u32 %s2152_s12, 4  ;;  %s16_s15 = sshll.u32 %s2153_s14, 4  ;;  %s29_s13 = int_to_ptr.vmem [resolvable:$true] %s28_s13  ;;  %s2178_s15 = int_to_ptr.vmem [resolvable:$true] %s16_s15 }
   0x4   :  { %s2058_s18 = scalar_lea.hbm %s2316_s1, 73728 }
   0x5   :  { %p2059_p0 = scmp.ne.s32.totalorder %s2316_s1, %s2058_s18  ;;  %p2062_p1 = scmp.lt.u32.totalorder %s2058_s18, %s2316_s1 }
   0x7   :  { %p2064_p2 = pnand %p2062_p1, %p2059_p0 }
   0x9   :  { %2067 = shalt.err (!%p2064_p2)
}
   0xa   :  { %s2068_s23 = scalar_lea.vmem %s29_s13, 73728  ;;  %p2073_p4 = scmp.lt.s32.totalorder %s29_s13, %s29_s13 }
   0xb   :  { %p2069_p3 = scmp.ne.s32.totalorder %s29_s13, %s2068_s23  ;;  %p2074_p5 = scmp.lt.s32.totalorder %s2068_s23, %s2068_s23 }
   0xd   :  { %p2075_p6 = por %p2074_p5, %p2073_p4 }
   0xf   :  { %p2076_p7 = pnand %p2075_p6, %p2069_p3 }
  0x11   :  { %2079 = shalt.err (!%p2076_p7)
}
  0x12   :  { %s2154_s24 = smov 768   ;;  %s2155_s25 = smov 48  }
  0x13   :  { %34 = dma.hbm_to_vmem [thread:$0]  %s2316_s1, 73728, %s29_s13, [#allocation6], %s2154_s24, %s2154_s24, %s2155_s25  }
  0x14   :  { %s2080_s30 = scalar_lea.hbm %s2315_s0, 1536 }
  0x15   :  { %p2081_p8 = scmp.ne.s32.totalorder %s2315_s0, %s2080_s30  ;;  %p2084_p9 = scmp.lt.u32.totalorder %s2080_s30, %s2315_s0 }
  0x17   :  { %p2086_p10 = pnand %p2084_p9, %p2081_p8 }
  0x19   :  { %2089 = shalt.err (!%p2086_p10)
}
  0x1a   :  { %s2090_s8 = scalar_lea.vmem %s2178_s15, 1536  ;;  %p2095_p12 = scmp.lt.s32.totalorder %s2178_s15, %s2178_s15 }
  0x1b   :  { %p2091_p11 = scmp.ne.s32.totalorder %s2178_s15, %s2090_s8  ;;  %p2096_p13 = scmp.lt.s32.totalorder %s2090_s8, %s2090_s8 }
  0x1d   :  { %p2097_p0 = por %p2096_p13, %p2095_p12 }
  0x1f   :  { %p2098_p1 = pnand %p2097_p0, %p2091_p11 }
  0x21   :  { %2101 = shalt.err (!%p2098_p1)
}
  0x22   :  { %22 = dma.hbm_to_vmem [thread:$0]  %s2315_s0, 1536, %s2178_s15, [#allocation3], %s2154_s24, %s2154_s24, %s2155_s25  }
  0x23   :  { %s2156_s10 = smov [#allocation7]   ;;  %s2102_s14 = scalar_lea.hbm %s2317_s2, 96 }
  0x24   :  { %s41_s11 = sshll.u32 %s2156_s10, 4  ;;  %p2103_p2 = scmp.ne.s32.totalorder %s2317_s2, %s2102_s14  ;;  %s42_s11 = int_to_ptr.vmem [resolvable:$true] %s41_s11 }
  0x25   :  { %p2106_p3 = scmp.lt.u32.totalorder %s2102_s14, %s2317_s2 }
  0x27   :  { %p2108_p4 = pnand %p2106_p3, %p2103_p2 }
  0x29   :  { %2111 = shalt.err (!%p2108_p4)
}
  0x2a   :  { %s2112_s20 = scalar_lea.vmem %s42_s11, 96  ;;  %p2117_p6 = scmp.lt.s32.totalorder %s42_s11, %s42_s11 }
  0x2b   :  { %p2113_p5 = scmp.ne.s32.totalorder %s42_s11, %s2112_s20  ;;  %p2118_p7 = scmp.lt.s32.totalorder %s2112_s20, %s2112_s20 }
  0x2d   :  { %p2119_p8 = por %p2118_p7, %p2117_p6 }
  0x2f   :  { %p2120_p9 = pnand %p2119_p8, %p2113_p5 }
  0x31   :  { %2123 = shalt.err (!%p2120_p9)
}
  0x32   :  { %44 = dma.hbm_to_vmem [thread:$0]  %s2317_s2, 96, %s42_s11, [#allocation6]  }
  0x33   :  { %2146 = dma.done.wait [#allocation3], 1536  }
  0x34   :  { %2147 = vsyncadd [#allocation3], 4294965760 }
  0x35   :  { %2148 = dma.done.wait [#allocation6], 73824  }
  0x36   :  { %2149 = vsyncadd [#allocation6], 4294893472  ;;  %v67_v0 = vld [vmem:[#allocation5 + $0x8] sm:$0xff]  ;;  %v73_v1 = vld [vmem:[#allocation5 + $0x38] sm:$0xff]  ;;  %s2157_s2 = smov [#allocation8]  }
  0x37   :  { %v69_v2 = vld [vmem:[#allocation5 + $0x18] sm:$0xff]  ;;  %v1397_v3 = vpack.c.bf16 %v73_v1, %v67_v0  ;;  %v75_v4 = vld [vmem:[#allocation5 + $0x48] sm:$0xff]  ;;  %v66_v5 = vld [vmem:[#allocation5] sm:$0xff]  ;;  %s1384_s21 = sshll.u32 %s2157_s2, 4  ;;  %s1385_s21 = int_to_ptr.vmem [resolvable:$true] %s1384_s21 }
  0x38   :  { %v72_v6 = vld [vmem:[#allocation5 + $0x30] sm:$0xff]  ;;  %v1461_v7 = vpack.c.bf16 %v75_v4, %v69_v2  ;;  %v74_v10 = vld [vmem:[#allocation5 + $0x40] sm:$0xff]  ;;  %v79_v11 = vld [vmem:[#allocation5 + $0x68] sm:$0xff]  ;;  %s2124_s22 = scalar_lea.vmem %s1385_s21, 1536  ;;  %p2129_p11 = scmp.lt.s32.totalorder %s1385_s21, %s1385_s21 }
  0x39   :  { %v1399_v8 = vpack.c.bf16 %v72_v6, %v66_v5  ;;  %v68_v9 = vld [vmem:[#allocation5 + $0x10] sm:$0xff]  ;;  %1398 = vmatprep.subr.bf16.mxu1 %v1397_v3  ;;  %v85_v13 = vld [vmem:[#allocation5 + $0x98] sm:$0xff]  ;;  %v87_v15 = vld [vmem:[#allocation5 + $0xa8] sm:$0xff]  ;;  %p2125_p10 = scmp.ne.s32.totalorder %s1385_s21, %s2124_s22  ;;  %p2130_p12 = scmp.lt.s32.totalorder %s2124_s22, %s2124_s22 }
  0x3a   :  { %v1463_v12 = vpack.c.bf16 %v74_v10, %v68_v9  ;;  %v81_v14 = vld [vmem:[#allocation5 + $0x78] sm:$0xff]  ;;  %1462 = vmatprep.subr.bf16.mxu0 %v1461_v7  ;;  %v1401_v16 = vpack.c.bf16 %v85_v13, %v79_v11  ;;  %v78_v18 = vld [vmem:[#allocation5 + $0x60] sm:$0xff]  ;;  %v84_v19 = vld [vmem:[#allocation5 + $0x90] sm:$0xff] }
  0x3b   :  { %1400 = vmatpush1.bf16.xpose.msra.mxu1 %v1399_v8  ;;  %v1465_v17 = vpack.c.bf16 %v87_v15, %v81_v14  ;;  %v80_v20 = vld [vmem:[#allocation5 + $0x70] sm:$0xff]  ;;  %v86_v21 = vld [vmem:[#allocation5 + $0xa0] sm:$0xff]  ;;  %v91_v22 = vld [vmem:[#allocation5 + $0xc8] sm:$0xff]  ;;  %v1403_v26 = vpack.c.bf16 %v84_v19, %v78_v18  ;;  %p2131_p13 = por %p2130_p12, %p2129_p11 }
  0x3c   :  { %1464 = vmatpush1.bf16.xpose.msra.mxu0 %v1463_v12  ;;  %1402 = vmatprep.subr.bf16.mxu1 %v1401_v16  ;;  %v97_v23 = vld [vmem:[#allocation5 + $0xf8] sm:$0xff]  ;;  %v99_v25 = vld [vmem:[#allocation5 + $0x108] sm:$0xff]  ;;  %v1467_v27 = vpack.c.bf16 %v86_v21, %v80_v20  ;;  %v90_v30 = vld [vmem:[#allocation5 + $0xc0] sm:$0xff] }
  0x3d   :  { %1466 = vmatprep.subr.bf16.mxu0 %v1465_v17  ;;  %v93_v24 = vld [vmem:[#allocation5 + $0xd8] sm:$0xff]  ;;  %v1405_v28 = vpack.c.bf16 %v97_v23, %v91_v22  ;;  %v96_v31 = vld [vmem:[#allocation5 + $0xf0] sm:$0xff]  ;;  %v98_v33 = vld [vmem:[#allocation5 + $0x100] sm:$0xff]  ;;  %p2132_p0 = pnand %p2131_p13, %p2125_p10 }
  0x3e   :  { %v1469_v29 = vpack.c.bf16 %v99_v25, %v93_v24  ;;  %v92_v32 = vld [vmem:[#allocation5 + $0xd0] sm:$0xff]  ;;  %v103_v34 = vld [vmem:[#allocation5 + $0x128] sm:$0xff]  ;;  %v109_v35 = vld [vmem:[#allocation5 + $0x158] sm:$0xff]  ;;  %v1407_v38 = vpack.c.bf16 %v96_v31, %v90_v30 }
  0x3f   :  { %v105_v36 = vld [vmem:[#allocation5 + $0x138] sm:$0xff]  ;;  %v111_v37 = vld [vmem:[#allocation5 + $0x168] sm:$0xff]  ;;  %v1471_v39 = vpack.c.bf16 %v98_v33, %v92_v32  ;;  %v1409_v40 = vpack.c.bf16 %v109_v35, %v103_v34  ;;  %v102_v42 = vld [vmem:[#allocation5 + $0x120] sm:$0xff] }
  0x40   :  { %v1473_v41 = vpack.c.bf16 %v111_v37, %v105_v36  ;;  %v108_v43 = vld [vmem:[#allocation5 + $0x150] sm:$0xff]  ;;  %v110_v45 = vld [vmem:[#allocation5 + $0x160] sm:$0xff]  ;;  %v115_v46 = vld [vmem:[#allocation5 + $0x188] sm:$0xff] }
  0x41   :  { %v104_v44 = vld [vmem:[#allocation5 + $0x130] sm:$0xff]  ;;  %v121_v47 = vld [vmem:[#allocation5 + $0x1b8] sm:$0xff]  ;;  %v123_v49 = vld [vmem:[#allocation5 + $0x1c8] sm:$0xff]  ;;  %v1411_v50 = vpack.c.bf16 %v108_v43, %v102_v42 }
  0x42   :  { %v117_v48 = vld [vmem:[#allocation5 + $0x198] sm:$0xff]  ;;  %v1475_v51 = vpack.c.bf16 %v110_v45, %v104_v44  ;;  %v1413_v52 = vpack.c.bf16 %v121_v47, %v115_v46  ;;  %v114_v54 = vld [vmem:[#allocation5 + $0x180] sm:$0xff]  ;;  %v120_v55 = vld [vmem:[#allocation5 + $0x1b0] sm:$0xff] }
  0x43   :  { %1404 = vmatpush1.bf16.xpose.msra.mxu1 %v1403_v26  ;;  %v1477_v53 = vpack.c.bf16 %v123_v49, %v117_v48  ;;  %v116_v56 = vld [vmem:[#allocation5 + $0x190] sm:$0xff]  ;;  %v122_v57 = vld [vmem:[#allocation5 + $0x1c0] sm:$0xff]  ;;  %v127_v58 = vld [vmem:[#allocation5 + $0x1e8] sm:$0xff]  ;;  %v1415_v62 = vpack.c.bf16 %v120_v55, %v114_v54 }
  0x44   :  { %1468 = vmatpush1.bf16.xpose.msra.mxu0 %v1467_v27  ;;  %1406 = vmatprep.subr.bf16.mxu1 %v1405_v28  ;;  %v133_v59 = vld [vmem:[#allocation5 + $0x218] sm:$0xff]  ;;  %v135_v61 = vld [vmem:[#allocation5 + $0x228] sm:$0xff]  ;;  %v1479_v63 = vpack.c.bf16 %v122_v57, %v116_v56  ;;  %v126_v2 = vld [vmem:[#allocation5 + $0x1e0] sm:$0xff] }
  0x45   :  { %1470 = vmatprep.subr.bf16.mxu0 %v1469_v29  ;;  %v129_v60 = vld [vmem:[#allocation5 + $0x1f8] sm:$0xff]  ;;  %v1417_v0 = vpack.c.bf16 %v133_v59, %v127_v58  ;;  %v132_v3 = vld [vmem:[#allocation5 + $0x210] sm:$0xff]  ;;  %v134_v5 = vld [vmem:[#allocation5 + $0x220] sm:$0xff] }
  0x46   :  { %v1481_v1 = vpack.c.bf16 %v135_v61, %v129_v60  ;;  %v128_v4 = vld [vmem:[#allocation5 + $0x1f0] sm:$0xff]  ;;  %v139_v6 = vld [vmem:[#allocation5 + $0x248] sm:$0xff]  ;;  %v145_v7 = vld [vmem:[#allocation5 + $0x278] sm:$0xff]  ;;  %v1419_v10 = vpack.c.bf16 %v132_v3, %v126_v2 }
  0x47   :  { %v141_v8 = vld [vmem:[#allocation5 + $0x258] sm:$0xff]  ;;  %v147_v9 = vld [vmem:[#allocation5 + $0x288] sm:$0xff]  ;;  %v1483_v11 = vpack.c.bf16 %v134_v5, %v128_v4  ;;  %v1421_v12 = vpack.c.bf16 %v145_v7, %v139_v6  ;;  %v138_v16 = vld [vmem:[#allocation5 + $0x240] sm:$0xff] }
  0x48   :  { %v1485_v13 = vpack.c.bf16 %v147_v9, %v141_v8  ;;  %v2227_v14 = vld [vmem:[#allocation2 + $0x8] sm:$0xff]  ;;  %v2230_v15 = vld [vmem:[#allocation2 + $0x18] sm:$0xff]  ;;  %v144_v17 = vld [vmem:[#allocation5 + $0x270] sm:$0xff] }
  0x49   :  { %738 = vmatprep.mubr.f32.mxu1 %v2227_v14  ;;  %815 = vmatprep.mubr.f32.mxu0 %v2230_v15  ;;  %v140_v18 = vld [vmem:[#allocation5 + $0x250] sm:$0xff]  ;;  %v146_v19 = vld [vmem:[#allocation5 + $0x280] sm:$0xff]  ;;  %v151_v20 = vld [vmem:[#allocation5 + $0x2a8] sm:$0xff]  ;;  %v1423_v24 = vpack.c.bf16 %v144_v17, %v138_v16 }
  0x4a   :  { %v157_v21 = vld [vmem:[#allocation5 + $0x2d8] sm:$0xff]  ;;  %v159_v23 = vld [vmem:[#allocation5 + $0x2e8] sm:$0xff]  ;;  %v1487_v25 = vpack.c.bf16 %v146_v19, %v140_v18  ;;  %v150_v28 = vld [vmem:[#allocation5 + $0x2a0] sm:$0xff] }
  0x4b   :  { %1408 = vmatpush1.bf16.xpose.msra.mxu1 %v1407_v38  ;;  %v153_v22 = vld [vmem:[#allocation5 + $0x2b8] sm:$0xff]  ;;  %v1425_v26 = vpack.c.bf16 %v157_v21, %v151_v20  ;;  %v156_v29 = vld [vmem:[#allocation5 + $0x2d0] sm:$0xff]  ;;  %v158_v31 = vld [vmem:[#allocation5 + $0x2e0] sm:$0xff] }
  0x4c   :  { %1472 = vmatpush1.bf16.xpose.msra.mxu0 %v1471_v39  ;;  %1410 = vmatprep.subr.bf16.mxu1 %v1409_v40  ;;  %v1489_v27 = vpack.c.bf16 %v159_v23, %v153_v22  ;;  %v152_v30 = vld [vmem:[#allocation5 + $0x2b0] sm:$0xff]  ;;  %v163_v32 = vld [vmem:[#allocation5 + $0x308] sm:$0xff]  ;;  %v169_v33 = vld [vmem:[#allocation5 + $0x338] sm:$0xff]  ;;  %v1427_v36 = vpack.c.bf16 %v156_v29, %v150_v28 }
  0x4d   :  { %1474 = vmatprep.subr.bf16.mxu0 %v1473_v41  ;;  %v165_v34 = vld [vmem:[#allocation5 + $0x318] sm:$0xff]  ;;  %v171_v35 = vld [vmem:[#allocation5 + $0x348] sm:$0xff]  ;;  %v1491_v37 = vpack.c.bf16 %v158_v31, %v152_v30  ;;  %v1429_v38 = vpack.c.bf16 %v169_v33, %v163_v32  ;;  %v162_v40 = vld [vmem:[#allocation5 + $0x300] sm:$0xff] }
  0x4e   :  { %v1493_v39 = vpack.c.bf16 %v171_v35, %v165_v34  ;;  %v168_v41 = vld [vmem:[#allocation5 + $0x330] sm:$0xff]  ;;  %v170_v43 = vld [vmem:[#allocation5 + $0x340] sm:$0xff]  ;;  %v175_v44 = vld [vmem:[#allocation5 + $0x368] sm:$0xff] }
  0x4f   :  { %v164_v42 = vld [vmem:[#allocation5 + $0x310] sm:$0xff]  ;;  %v181_v45 = vld [vmem:[#allocation5 + $0x398] sm:$0xff]  ;;  %v183_v47 = vld [vmem:[#allocation5 + $0x3a8] sm:$0xff]  ;;  %v1431_v48 = vpack.c.bf16 %v168_v41, %v162_v40 }
  0x50   :  { %v177_v46 = vld [vmem:[#allocation5 + $0x378] sm:$0xff]  ;;  %v1495_v49 = vpack.c.bf16 %v170_v43, %v164_v42  ;;  %v176_v54 = vld [vmem:[#allocation5 + $0x370] sm:$0xff]  ;;  %v182_v55 = vld [vmem:[#allocation5 + $0x3a0] sm:$0xff] }
  0x51   :  { %v187_v56 = vld [vmem:[#allocation5 + $0x3c8] sm:$0xff]  ;;  %v193_v57 = vld [vmem:[#allocation5 + $0x3f8] sm:$0xff]  ;;  %v1499_v61 = vpack.c.bf16 %v182_v55, %v176_v54  ;;  %v188_v2 = vld [vmem:[#allocation5 + $0x3d0] sm:$0xff] }
  0x52   :  { %v189_v58 = vld [vmem:[#allocation5 + $0x3d8] sm:$0xff]  ;;  %v195_v59 = vld [vmem:[#allocation5 + $0x408] sm:$0xff]  ;;  %v194_v3 = vld [vmem:[#allocation5 + $0x400] sm:$0xff] }
  0x53   :  { %1412 = vmatpush1.bf16.xpose.msra.mxu1 %v1411_v50  ;;  %v1433_v50 = vpack.c.bf16 %v181_v45, %v175_v44  ;;  %v199_v4 = vld [vmem:[#allocation5 + $0x428] sm:$0xff]  ;;  %v205_v5 = vld [vmem:[#allocation5 + $0x458] sm:$0xff]  ;;  %v1503_v9 = vpack.c.bf16 %v194_v3, %v188_v2  ;;  %v200_v16 = vld [vmem:[#allocation5 + $0x430] sm:$0xff] }
  0x54   :  { %1476 = vmatpush1.bf16.xpose.msra.mxu0 %v1475_v51  ;;  %1414 = vmatprep.subr.bf16.mxu1 %v1413_v52  ;;  %v1497_v51 = vpack.c.bf16 %v183_v47, %v177_v46  ;;  %v174_v52 = vld [vmem:[#allocation5 + $0x360] sm:$0xff]  ;;  %v201_v6 = vld [vmem:[#allocation5 + $0x438] sm:$0xff]  ;;  %v207_v7 = vld [vmem:[#allocation5 + $0x468] sm:$0xff] }
  0x55   :  { %1478 = vmatprep.subr.bf16.mxu0 %v1477_v53  ;;  %v180_v53 = vld [vmem:[#allocation5 + $0x390] sm:$0xff]  ;;  %v206_v17 = vld [vmem:[#allocation5 + $0x460] sm:$0xff]  ;;  %v211_v18 = vld [vmem:[#allocation5 + $0x488] sm:$0xff] }
  0x56   :  { %v1435_v60 = vpack.c.bf16 %v180_v53, %v174_v52  ;;  %v217_v19 = vld [vmem:[#allocation5 + $0x4b8] sm:$0xff]  ;;  %v219_v21 = vld [vmem:[#allocation5 + $0x4c8] sm:$0xff]  ;;  %v1507_v23 = vpack.c.bf16 %v206_v17, %v200_v16  ;;  %v212_v28 = vld [vmem:[#allocation5 + $0x490] sm:$0xff] }
  0x57   :  { %v213_v20 = vld [vmem:[#allocation5 + $0x498] sm:$0xff]  ;;  %v218_v29 = vld [vmem:[#allocation5 + $0x4c0] sm:$0xff]  ;;  %v223_v30 = vld [vmem:[#allocation5 + $0x4e8] sm:$0xff] }
  0x58   :  { %v229_v31 = vld [vmem:[#allocation5 + $0x518] sm:$0xff]  ;;  %v231_v33 = vld [vmem:[#allocation5 + $0x528] sm:$0xff]  ;;  %v1511_v35 = vpack.c.bf16 %v218_v29, %v212_v28  ;;  %v224_v40 = vld [vmem:[#allocation5 + $0x4f0] sm:$0xff] }
  0x59   :  { %v225_v32 = vld [vmem:[#allocation5 + $0x4f8] sm:$0xff]  ;;  %v230_v41 = vld [vmem:[#allocation5 + $0x520] sm:$0xff]  ;;  %v235_v42 = vld [vmem:[#allocation5 + $0x548] sm:$0xff] }
  0x5a   :  { %v241_v43 = vld [vmem:[#allocation5 + $0x578] sm:$0xff]  ;;  %v243_v45 = vld [vmem:[#allocation5 + $0x588] sm:$0xff]  ;;  %v1515_v47 = vpack.c.bf16 %v230_v41, %v224_v40  ;;  %v236_v52 = vld [vmem:[#allocation5 + $0x550] sm:$0xff] }
  0x5b   :  { %1416 = vmatpush1.bf16.xpose.msra.mxu1 %v1415_v62  ;;  %v1437_v62 = vpack.c.bf16 %v193_v57, %v187_v56  ;;  %v237_v44 = vld [vmem:[#allocation5 + $0x558] sm:$0xff]  ;;  %v242_v53 = vld [vmem:[#allocation5 + $0x580] sm:$0xff]  ;;  %v247_v54 = vld [vmem:[#allocation5 + $0x5a8] sm:$0xff] }
  0x5c   :  { %1480 = vmatpush1.bf16.xpose.msra.mxu0 %v1479_v63  ;;  %1418 = vmatprep.subr.bf16.mxu1 %v1417_v0  ;;  %v1501_v63 = vpack.c.bf16 %v195_v59, %v189_v58  ;;  %v186_v0 = vld [vmem:[#allocation5 + $0x3c0] sm:$0xff]  ;;  %v253_v55 = vld [vmem:[#allocation5 + $0x5d8] sm:$0xff]  ;;  %v255_v57 = vld [vmem:[#allocation5 + $0x5e8] sm:$0xff]  ;;  %v1519_v59 = vpack.c.bf16 %v242_v53, %v236_v52 }
  0x5d   :  { %1482 = vmatprep.subr.bf16.mxu0 %v1481_v1  ;;  %v192_v1 = vld [vmem:[#allocation5 + $0x3f0] sm:$0xff]  ;;  %v249_v56 = vld [vmem:[#allocation5 + $0x5b8] sm:$0xff]  ;;  %v259_v2 = vld [vmem:[#allocation5 + $0x608] sm:$0xff] }
  0x5e   :  { %v1439_v8 = vpack.c.bf16 %v192_v1, %v186_v0  ;;  %v248_v0 = vld [vmem:[#allocation5 + $0x5b0] sm:$0xff]  ;;  %v254_v1 = vld [vmem:[#allocation5 + $0x5e0] sm:$0xff]  ;;  %v265_v3 = vld [vmem:[#allocation5 + $0x638] sm:$0xff] }
  0x5f   :  { %v271_v16 = vld [vmem:[#allocation5 + $0x668] sm:$0xff]  ;;  %v277_v17 = vld [vmem:[#allocation5 + $0x698] sm:$0xff]  ;;  %v88_v28 = vld [vmem:[#allocation5 + $0xb0] sm:$0xff] }
  0x60   :  { %v63_v29 = vld [vmem:[#allocation2 + $0x48] sm:$0xff] }
  0x63   :  { %1420 = vmatpush1.bf16.xpose.msra.mxu1 %v1419_v10  ;;  %v1441_v10 = vpack.c.bf16 %v205_v5, %v199_v4  ;;  %v71_v4 = vld [vmem:[#allocation5 + $0x28] sm:$0xff]  ;;  %v77_v5 = vld [vmem:[#allocation5 + $0x58] sm:$0xff] }
  0x64   :  { %1484 = vmatpush1.bf16.xpose.msra.mxu0 %v1483_v11  ;;  %1422 = vmatprep.subr.bf16.mxu1 %v1421_v12  ;;  %v1505_v11 = vpack.c.bf16 %v207_v7, %v201_v6  ;;  %v198_v12 = vld [vmem:[#allocation5 + $0x420] sm:$0xff]  ;;  %v1523_v7 = vpack.c.bf16 %v254_v1, %v248_v0 }
  0x65   :  { %1486 = vmatprep.subr.bf16.mxu0 %v1485_v13  ;;  %v204_v13 = vld [vmem:[#allocation5 + $0x450] sm:$0xff] }
  0x66   :  { %v1443_v22 = vpack.c.bf16 %v204_v13, %v198_v12  ;;  %v264_v12 = vld [vmem:[#allocation5 + $0x630] sm:$0xff] }
  0x67   :  { %v76_v13 = vld [vmem:[#allocation5 + $0x50] sm:$0xff] }
  0x6b   :  { %1424 = vmatpush1.bf16.xpose.msra.mxu1 %v1423_v24  ;;  %v1445_v24 = vpack.c.bf16 %v217_v19, %v211_v18  ;;  %v83_v18 = vld [vmem:[#allocation5 + $0x88] sm:$0xff]  ;;  %v89_v19 = vld [vmem:[#allocation5 + $0xb8] sm:$0xff] }
  0x6c   :  { %1488 = vmatpush1.bf16.xpose.msra.mxu0 %v1487_v25  ;;  %1426 = vmatprep.subr.bf16.mxu1 %v1425_v26  ;;  %v1509_v25 = vpack.c.bf16 %v219_v21, %v213_v20  ;;  %v210_v26 = vld [vmem:[#allocation5 + $0x480] sm:$0xff] }
  0x6d   :  { %1490 = vmatprep.subr.bf16.mxu0 %v1489_v27  ;;  %v216_v27 = vld [vmem:[#allocation5 + $0x4b0] sm:$0xff]  ;;  %v2233_v20 = vld [vmem:[#allocation2] sm:$0xff] }
  0x6e   :  { %v1447_v34 = vpack.c.bf16 %v216_v27, %v210_v26  ;;  %v2236_v26 = vld [vmem:[#allocation2 + $0x38] sm:$0xff]  ;;  %v82_v27 = vld [vmem:[#allocation5 + $0x80] sm:$0xff] }
  0x6f   :  { %v1531_v40 = vpack.c.bf16 %v88_v28, %v82_v27 }
  0x73   :  { %1428 = vmatpush1.bf16.xpose.msra.mxu1 %v1427_v36  ;;  %v1449_v36 = vpack.c.bf16 %v229_v31, %v223_v30  ;;  %v2238_v30 = vld [vmem:[#allocation2 + $0x30] sm:$0xff]  ;;  %v270_v31 = vld [vmem:[#allocation5 + $0x660] sm:$0xff] }
  0x74   :  { %1492 = vmatpush1.bf16.xpose.msra.mxu0 %v1491_v37  ;;  %1430 = vmatprep.subr.bf16.mxu1 %v1429_v38  ;;  %v1513_v37 = vpack.c.bf16 %v231_v33, %v225_v32  ;;  %v222_v38 = vld [vmem:[#allocation5 + $0x4e0] sm:$0xff]  ;;  %v276_v32 = vld [vmem:[#allocation5 + $0x690] sm:$0xff] }
  0x75   :  { %1494 = vmatprep.subr.bf16.mxu0 %v1493_v39  ;;  %v228_v39 = vld [vmem:[#allocation5 + $0x510] sm:$0xff]  ;;  %v62_v33 = vld [vmem:[#allocation2 + $0x40] sm:$0xff] }
  0x76   :  { %v1451_v46 = vpack.c.bf16 %v228_v39, %v222_v38  ;;  %v101_v38 = vld [vmem:[#allocation5 + $0x118] sm:$0xff]  ;;  %v1595_v39 = vpack.c.bf16 %v276_v32, %v270_v31  ;;  %v142_v32 = vld [vmem:[#allocation5 + $0x260] sm:$0xff] }
  0x7b   :  { %1432 = vmatpush1.bf16.xpose.msra.mxu1 %v1431_v48  ;;  %v1453_v48 = vpack.c.bf16 %v241_v43, %v235_v42  ;;  %v94_v43 = vld [vmem:[#allocation5 + $0xe0] sm:$0xff] }
  0x7c   :  { %1496 = vmatpush1.bf16.xpose.msra.mxu0 %v1495_v49  ;;  %1434 = vmatprep.subr.bf16.mxu1 %v1433_v50  ;;  %v1517_v49 = vpack.c.bf16 %v243_v45, %v237_v44  ;;  %v234_v50 = vld [vmem:[#allocation5 + $0x540] sm:$0xff]  ;;  %v288_v45 = vld [vmem:[#allocation5 + $0x6f0] sm:$0xff] }
  0x7d   :  { %1498 = vmatprep.subr.bf16.mxu0 %v1497_v51  ;;  %v240_v51 = vld [vmem:[#allocation5 + $0x570] sm:$0xff]  ;;  %v282_v44 = vld [vmem:[#allocation5 + $0x6c0] sm:$0xff] }
  0x7e   :  { %v1455_v58 = vpack.c.bf16 %v240_v51, %v234_v50  ;;  %v113_v50 = vld [vmem:[#allocation5 + $0x178] sm:$0xff]  ;;  %v1599_v51 = vpack.c.bf16 %v288_v45, %v282_v44  ;;  %v154_v44 = vld [vmem:[#allocation5 + $0x2c0] sm:$0xff] }
  0x7f   :  { %v342_v45 = vld [vmem:[#allocation5 + $0x8a0] sm:$0xff] }
  0x83   :  { %1436 = vmatpush1.bf16.xpose.msra.mxu1 %v1435_v60  ;;  %v1457_v60 = vpack.c.bf16 %v253_v55, %v247_v54  ;;  %v106_v55 = vld [vmem:[#allocation5 + $0x140] sm:$0xff] }
  0x84   :  { %1500 = vmatpush1.bf16.xpose.msra.mxu0 %v1499_v61  ;;  %1438 = vmatprep.subr.bf16.mxu1 %v1437_v62  ;;  %v1521_v61 = vpack.c.bf16 %v255_v57, %v249_v56  ;;  %v246_v62 = vld [vmem:[#allocation5 + $0x5a0] sm:$0xff]  ;;  %v300_v57 = vld [vmem:[#allocation5 + $0x750] sm:$0xff] }
  0x85   :  { %1502 = vmatprep.subr.bf16.mxu0 %v1501_v63  ;;  %v252_v63 = vld [vmem:[#allocation5 + $0x5d0] sm:$0xff]  ;;  %v294_v56 = vld [vmem:[#allocation5 + $0x720] sm:$0xff] }
  0x86   :  { %v1459_v6 = vpack.c.bf16 %v252_v63, %v246_v62  ;;  %v125_v62 = vld [vmem:[#allocation5 + $0x1d8] sm:$0xff]  ;;  %v1603_v63 = vpack.c.bf16 %v300_v57, %v294_v56  ;;  %v166_v56 = vld [vmem:[#allocation5 + $0x320] sm:$0xff] }
  0x87   :  { %v354_v57 = vld [vmem:[#allocation5 + $0x900] sm:$0xff] }
  0x8b   :  { %1440 = vmatpush1.bf16.xpose.msra.mxu1 %v1439_v8  ;;  %v1589_v8 = vpack.c.bf16 %v265_v3, %v259_v2  ;;  %v118_v3 = vld [vmem:[#allocation5 + $0x1a0] sm:$0xff] }
  0x8c   :  { %1504 = vmatpush1.bf16.xpose.msra.mxu0 %v1503_v9  ;;  %1442 = vmatprep.subr.bf16.mxu1 %v1441_v10  ;;  %v1525_v9 = vpack.c.bf16 %v77_v5, %v71_v4  ;;  %v70_v10 = vld [vmem:[#allocation5 + $0x20] sm:$0xff]  ;;  %v312_v5 = vld [vmem:[#allocation5 + $0x7b0] sm:$0xff] }
  0x8d   :  { %1506 = vmatprep.subr.bf16.mxu0 %v1505_v11  ;;  %v258_v11 = vld [vmem:[#allocation5 + $0x600] sm:$0xff] }
  0x8e   :  { %v1591_v21 = vpack.c.bf16 %v264_v12, %v258_v11  ;;  %v306_v4 = vld [vmem:[#allocation5 + $0x780] sm:$0xff] }
  0x8f   :  { %v1607_v11 = vpack.c.bf16 %v312_v5, %v306_v4  ;;  %v178_v4 = vld [vmem:[#allocation5 + $0x380] sm:$0xff] }
  0x90   :  { %v366_v5 = vld [vmem:[#allocation5 + $0x960] sm:$0xff] }
  0x93   :  { %1444 = vmatpush1.bf16.xpose.msra.mxu1 %v1443_v22  ;;  %v56_v22 = vld [vmem:[#allocation2 + $0x10] sm:$0xff] }
  0x94   :  { %1508 = vmatpush1.bf16.xpose.msra.mxu0 %v1507_v23  ;;  %1446 = vmatprep.subr.bf16.mxu1 %v1445_v24  ;;  %v1527_v23 = vpack.c.bf16 %v76_v13, %v70_v10  ;;  %v1593_v24 = vpack.c.bf16 %v277_v17, %v271_v16  ;;  %v137_v10 = vld [vmem:[#allocation5 + $0x238] sm:$0xff]  ;;  %v130_v17 = vld [vmem:[#allocation5 + $0x200] sm:$0xff] }
  0x95   :  { %1510 = vmatprep.subr.bf16.mxu0 %v1509_v25  ;;  %v1529_v25 = vpack.c.bf16 %v89_v19, %v83_v18  ;;  %v318_v18 = vld [vmem:[#allocation5 + $0x7e0] sm:$0xff]  ;;  %v324_v19 = vld [vmem:[#allocation5 + $0x810] sm:$0xff] }
  0x96   :  { %v1611_v27 = vpack.c.bf16 %v324_v19, %v318_v18  ;;  %v190_v18 = vld [vmem:[#allocation5 + $0x3e0] sm:$0xff] }
  0x97   :  { %v378_v19 = vld [vmem:[#allocation5 + $0x9c0] sm:$0xff] }
  0x9b   :  { %1448 = vmatpush1.bf16.xpose.msra.mxu1 %v1447_v34  ;;  %v283_v34 = vld [vmem:[#allocation5 + $0x6c8] sm:$0xff] }
  0x9c   :  { %1512 = vmatpush1.bf16.xpose.msra.mxu0 %v1511_v35  ;;  %1450 = vmatprep.subr.bf16.mxu1 %v1449_v36  ;;  %v289_v35 = vld [vmem:[#allocation5 + $0x6f8] sm:$0xff]  ;;  %v59_v36 = vld [vmem:[#allocation2 + $0x28] sm:$0xff] }
  0x9d   :  { %1514 = vmatprep.subr.bf16.mxu0 %v1513_v37  ;;  %v95_v37 = vld [vmem:[#allocation5 + $0xe8] sm:$0xff]  ;;  %v1597_v41 = vpack.c.bf16 %v289_v35, %v283_v34  ;;  %v336_v34 = vld [vmem:[#allocation5 + $0x870] sm:$0xff] }
  0x9e   :  { %v1533_v42 = vpack.c.bf16 %v101_v38, %v95_v37  ;;  %v148_v35 = vld [vmem:[#allocation5 + $0x290] sm:$0xff]  ;;  %v349_v37 = vld [vmem:[#allocation5 + $0x8d8] sm:$0xff]  ;;  %v155_v38 = vld [vmem:[#allocation5 + $0x2c8] sm:$0xff] }
  0xa3   :  { %1452 = vmatpush1.bf16.xpose.msra.mxu1 %v1451_v46  ;;  %v100_v46 = vld [vmem:[#allocation5 + $0x110] sm:$0xff] }
  0xa4   :  { %1516 = vmatpush1.bf16.xpose.msra.mxu0 %v1515_v47  ;;  %1454 = vmatprep.subr.bf16.mxu1 %v1453_v48  ;;  %v295_v47 = vld [vmem:[#allocation5 + $0x728] sm:$0xff]  ;;  %v301_v48 = vld [vmem:[#allocation5 + $0x758] sm:$0xff]  ;;  %v1535_v52 = vpack.c.bf16 %v100_v46, %v94_v43  ;;  %v348_v46 = vld [vmem:[#allocation5 + $0x8d0] sm:$0xff] }
  0xa5   :  { %1518 = vmatprep.subr.bf16.mxu0 %v1517_v49  ;;  %v107_v49 = vld [vmem:[#allocation5 + $0x148] sm:$0xff]  ;;  %v1601_v53 = vpack.c.bf16 %v301_v48, %v295_v47  ;;  %v160_v47 = vld [vmem:[#allocation5 + $0x2f0] sm:$0xff] }
  0xa6   :  { %v1537_v54 = vpack.c.bf16 %v113_v50, %v107_v49  ;;  %v355_v48 = vld [vmem:[#allocation5 + $0x908] sm:$0xff]  ;;  %v361_v49 = vld [vmem:[#allocation5 + $0x938] sm:$0xff] }
  0xa7   :  { %v167_v50 = vld [vmem:[#allocation5 + $0x328] sm:$0xff] }
  0xab   :  { %1456 = vmatpush1.bf16.xpose.msra.mxu1 %v1455_v58  ;;  %v112_v58 = vld [vmem:[#allocation5 + $0x170] sm:$0xff] }
  0xac   :  { %1520 = vmatpush1.bf16.xpose.msra.mxu0 %v1519_v59  ;;  %1458 = vmatprep.subr.bf16.mxu1 %v1457_v60  ;;  %v307_v59 = vld [vmem:[#allocation5 + $0x788] sm:$0xff]  ;;  %v313_v60 = vld [vmem:[#allocation5 + $0x7b8] sm:$0xff]  ;;  %v1539_v0 = vpack.c.bf16 %v112_v58, %v106_v55  ;;  %v360_v58 = vld [vmem:[#allocation5 + $0x930] sm:$0xff] }
  0xad   :  { %1522 = vmatprep.subr.bf16.mxu0 %v1521_v61  ;;  %v119_v61 = vld [vmem:[#allocation5 + $0x1a8] sm:$0xff]  ;;  %v1605_v1 = vpack.c.bf16 %v313_v60, %v307_v59  ;;  %v172_v59 = vld [vmem:[#allocation5 + $0x350] sm:$0xff] }
  0xae   :  { %v1541_v2 = vpack.c.bf16 %v125_v62, %v119_v61  ;;  %v367_v60 = vld [vmem:[#allocation5 + $0x968] sm:$0xff]  ;;  %v373_v61 = vld [vmem:[#allocation5 + $0x998] sm:$0xff] }
  0xaf   :  { %v179_v62 = vld [vmem:[#allocation5 + $0x388] sm:$0xff] }
  0xb3   :  { %1460 = vmatpush1.bf16.xpose.msra.mxu1 %v1459_v6  ;;  %v124_v6 = vld [vmem:[#allocation5 + $0x1d0] sm:$0xff] }
  0xb4   :  { %1524 = vmatpush1.bf16.xpose.msra.mxu0 %v1523_v7  ;;  %1590 = vmatprep.subr.bf16.mxu1 %v1589_v8  ;;  %v319_v7 = vld [vmem:[#allocation5 + $0x7e8] sm:$0xff]  ;;  %v325_v8 = vld [vmem:[#allocation5 + $0x818] sm:$0xff]  ;;  %v1543_v12 = vpack.c.bf16 %v124_v6, %v118_v3  ;;  %v372_v6 = vld [vmem:[#allocation5 + $0x990] sm:$0xff] }
  0xb5   :  { %1526 = vmatprep.subr.bf16.mxu0 %v1525_v9  ;;  %v131_v9 = vld [vmem:[#allocation5 + $0x208] sm:$0xff]  ;;  %v1609_v13 = vpack.c.bf16 %v325_v8, %v319_v7  ;;  %v184_v7 = vld [vmem:[#allocation5 + $0x3b0] sm:$0xff] }
  0xb6   :  { %v1545_v16 = vpack.c.bf16 %v137_v10, %v131_v9  ;;  %v379_v8 = vld [vmem:[#allocation5 + $0x9c8] sm:$0xff]  ;;  %v385_v9 = vld [vmem:[#allocation5 + $0x9f8] sm:$0xff] }
  0xb7   :  { %v191_v10 = vld [vmem:[#allocation5 + $0x3e8] sm:$0xff] }
  0xba   :  { %739 = vmatmul.mubr.f32.vlgmr.msra.gmra.mrb[0].mxu1 %v2233_v20 }
  0xbb   :  { %816 = vmatmul.mubr.f32.vlgmr.msra.gmra.mrb[0].mxu0 %v56_v22  ;;  %1592 = vmatpush1.bf16.xpose.msra.mxu1 %v1591_v21  ;;  %v136_v21 = vld [vmem:[#allocation5 + $0x230] sm:$0xff]  ;;  %v331_v22 = vld [vmem:[#allocation5 + $0x848] sm:$0xff] }
  0xbc   :  { %1528 = vmatpush1.bf16.xpose.msra.mxu0 %v1527_v23  ;;  %1594 = vmatprep.subr.bf16.mxu1 %v1593_v24  ;;  %v337_v23 = vld [vmem:[#allocation5 + $0x878] sm:$0xff]  ;;  %v143_v24 = vld [vmem:[#allocation5 + $0x268] sm:$0xff]  ;;  %v1547_v28 = vpack.c.bf16 %v136_v21, %v130_v17  ;;  %v384_v21 = vld [vmem:[#allocation5 + $0x9f0] sm:$0xff] }
  0xbd   :  { %1530 = vmatprep.subr.bf16.mxu0 %v1529_v25  ;;  %744 = vmatprep.mubr.f32.mxu1 %v2236_v26  ;;  %v149_v25 = vld [vmem:[#allocation5 + $0x298] sm:$0xff] }
  0xbe   :  { %821 = vmatprep.mubr.f32.mxu0 %v63_v29  ;;  %745 = vmatmul.mubr.f32.gmra.mrb[2].mxu1 %v2238_v30  ;;  %v1613_v29 = vpack.c.bf16 %v337_v23, %v331_v22  ;;  %v1549_v31 = vpack.c.bf16 %v149_v25, %v143_v24  ;;  %v196_v22 = vld [vmem:[#allocation5 + $0x410] sm:$0xff]  ;;  %v391_v23 = vld [vmem:[#allocation5 + $0xa28] sm:$0xff]  ;;  %v397_v24 = vld [vmem:[#allocation5 + $0xa58] sm:$0xff] }
  0xbf   :  { %822 = vmatmul.mubr.f32.gmra.mrb[2].mxu0 %v62_v33  ;;  %969 = vmatprep.mubr.f32.mxu1 %v2227_v14  ;;  %v330_v33 = vld [vmem:[#allocation5 + $0x840] sm:$0xff]  ;;  %v203_v25 = vld [vmem:[#allocation5 + $0x448] sm:$0xff] }
  0xc0   :  { %892 = vmatprep.mubr.f32.mxu0 %v59_v36  ;;  %v343_v36 = vld [vmem:[#allocation5 + $0x8a8] sm:$0xff] }
  0xc3   :  { %1596 = vmatpush1.bf16.xpose.msra.mxu1 %v1595_v39  ;;  %v161_v39 = vld [vmem:[#allocation5 + $0x2f8] sm:$0xff] }
  0xc4   :  { %1532 = vmatpush1.bf16.xpose.msra.mxu0 %v1531_v40  ;;  %1598 = vmatprep.subr.bf16.mxu1 %v1597_v41  ;;  %v1615_v40 = vpack.c.bf16 %v336_v34, %v330_v33  ;;  %v1551_v41 = vpack.c.bf16 %v148_v35, %v142_v32  ;;  %v1553_v43 = vpack.c.bf16 %v161_v39, %v155_v38  ;;  %v202_v33 = vld [vmem:[#allocation5 + $0x440] sm:$0xff]  ;;  %v396_v35 = vld [vmem:[#allocation5 + $0xa50] sm:$0xff]  ;;  %v409_v38 = vld [vmem:[#allocation5 + $0xab8] sm:$0xff] }
  0xc5   :  { %1534 = vmatprep.subr.bf16.mxu0 %v1533_v42  ;;  %v1617_v42 = vpack.c.bf16 %v349_v37, %v343_v36  ;;  %v390_v34 = vld [vmem:[#allocation5 + $0xa20] sm:$0xff]  ;;  %v208_v36 = vld [vmem:[#allocation5 + $0x470] sm:$0xff]  ;;  %v403_v37 = vld [vmem:[#allocation5 + $0xa88] sm:$0xff] }
  0xc6   :  { %v215_v39 = vld [vmem:[#allocation5 + $0x4a8] sm:$0xff] }
  0xcb   :  { %1600 = vmatpush1.bf16.xpose.msra.mxu1 %v1599_v51  ;;  %v173_v51 = vld [vmem:[#allocation5 + $0x358] sm:$0xff] }
  0xcc   :  { %1536 = vmatpush1.bf16.xpose.msra.mxu0 %v1535_v52  ;;  %1602 = vmatprep.subr.bf16.mxu1 %v1601_v53  ;;  %v1619_v52 = vpack.c.bf16 %v348_v46, %v342_v45  ;;  %v1555_v53 = vpack.c.bf16 %v160_v47, %v154_v44  ;;  %v1557_v55 = vpack.c.bf16 %v173_v51, %v167_v50  ;;  %v214_v45 = vld [vmem:[#allocation5 + $0x4a0] sm:$0xff]  ;;  %v408_v47 = vld [vmem:[#allocation5 + $0xab0] sm:$0xff]  ;;  %v421_v50 = vld [vmem:[#allocation5 + $0xb18] sm:$0xff] }
  0xcd   :  { %1538 = vmatprep.subr.bf16.mxu0 %v1537_v54  ;;  %v1621_v54 = vpack.c.bf16 %v361_v49, %v355_v48  ;;  %v402_v46 = vld [vmem:[#allocation5 + $0xa80] sm:$0xff]  ;;  %v220_v48 = vld [vmem:[#allocation5 + $0x4d0] sm:$0xff]  ;;  %v415_v49 = vld [vmem:[#allocation5 + $0xae8] sm:$0xff] }
  0xce   :  { %v227_v51 = vld [vmem:[#allocation5 + $0x508] sm:$0xff] }
  0xd3   :  { %1604 = vmatpush1.bf16.xpose.msra.mxu1 %v1603_v63  ;;  %v185_v63 = vld [vmem:[#allocation5 + $0x3b8] sm:$0xff] }
  0xd4   :  { %1540 = vmatpush1.bf16.xpose.msra.mxu0 %v1539_v0  ;;  %1606 = vmatprep.subr.bf16.mxu1 %v1605_v1  ;;  %v1623_v0 = vpack.c.bf16 %v360_v58, %v354_v57  ;;  %v1559_v1 = vpack.c.bf16 %v172_v59, %v166_v56  ;;  %v1561_v3 = vpack.c.bf16 %v185_v63, %v179_v62  ;;  %v226_v57 = vld [vmem:[#allocation5 + $0x500] sm:$0xff]  ;;  %v420_v59 = vld [vmem:[#allocation5 + $0xb10] sm:$0xff]  ;;  %v433_v62 = vld [vmem:[#allocation5 + $0xb78] sm:$0xff] }
  0xd5   :  { %1542 = vmatprep.subr.bf16.mxu0 %v1541_v2  ;;  %v1625_v2 = vpack.c.bf16 %v373_v61, %v367_v60  ;;  %v414_v58 = vld [vmem:[#allocation5 + $0xae0] sm:$0xff]  ;;  %v232_v60 = vld [vmem:[#allocation5 + $0x530] sm:$0xff]  ;;  %v427_v61 = vld [vmem:[#allocation5 + $0xb48] sm:$0xff] }
  0xd6   :  { %v239_v63 = vld [vmem:[#allocation5 + $0x568] sm:$0xff] }
  0xdb   :  { %1608 = vmatpush1.bf16.xpose.msra.mxu1 %v1607_v11  ;;  %v197_v11 = vld [vmem:[#allocation5 + $0x418] sm:$0xff] }
  0xdc   :  { %1544 = vmatpush1.bf16.xpose.msra.mxu0 %v1543_v12  ;;  %1610 = vmatprep.subr.bf16.mxu1 %v1609_v13  ;;  %v1627_v12 = vpack.c.bf16 %v372_v6, %v366_v5  ;;  %v1563_v13 = vpack.c.bf16 %v184_v7, %v178_v4  ;;  %v1565_v17 = vpack.c.bf16 %v197_v11, %v191_v10  ;;  %v238_v5 = vld [vmem:[#allocation5 + $0x560] sm:$0xff]  ;;  %v432_v7 = vld [vmem:[#allocation5 + $0xb70] sm:$0xff]  ;;  %v445_v10 = vld [vmem:[#allocation5 + $0xbd8] sm:$0xff] }
  0xdd   :  { %1546 = vmatprep.subr.bf16.mxu0 %v1545_v16  ;;  %v1629_v16 = vpack.c.bf16 %v385_v9, %v379_v8  ;;  %v426_v6 = vld [vmem:[#allocation5 + $0xb40] sm:$0xff]  ;;  %v244_v8 = vld [vmem:[#allocation5 + $0x590] sm:$0xff]  ;;  %v439_v9 = vld [vmem:[#allocation5 + $0xba8] sm:$0xff] }
  0xde   :  { %v251_v11 = vld [vmem:[#allocation5 + $0x5c8] sm:$0xff] }
  0xe3   :  { %1612 = vmatpush1.bf16.xpose.msra.mxu1 %v1611_v27  ;;  %v209_v27 = vld [vmem:[#allocation5 + $0x478] sm:$0xff] }
  0xe4   :  { %1548 = vmatpush1.bf16.xpose.msra.mxu0 %v1547_v28  ;;  %1614 = vmatprep.subr.bf16.mxu1 %v1613_v29  ;;  %v1631_v28 = vpack.c.bf16 %v384_v21, %v378_v19  ;;  %v1567_v29 = vpack.c.bf16 %v196_v22, %v190_v18  ;;  %v1569_v32 = vpack.c.bf16 %v209_v27, %v203_v25  ;;  %v250_v19 = vld [vmem:[#allocation5 + $0x5c0] sm:$0xff]  ;;  %v444_v22 = vld [vmem:[#allocation5 + $0xbd0] sm:$0xff]  ;;  %v267_v25 = vld [vmem:[#allocation5 + $0x648] sm:$0xff] }
  0xe5   :  { %1550 = vmatprep.subr.bf16.mxu0 %v1549_v31  ;;  %v1633_v31 = vpack.c.bf16 %v397_v24, %v391_v23  ;;  %v438_v21 = vld [vmem:[#allocation5 + $0xba0] sm:$0xff]  ;;  %v256_v23 = vld [vmem:[#allocation5 + $0x5f0] sm:$0xff]  ;;  %v261_v24 = vld [vmem:[#allocation5 + $0x618] sm:$0xff] }
  0xe6   :  { %v451_v27 = vld [vmem:[#allocation5 + $0xc08] sm:$0xff] }
  0xeb   :  { %1616 = vmatpush1.bf16.xpose.msra.mxu1 %v1615_v40  ;;  %v221_v40 = vld [vmem:[#allocation5 + $0x4d8] sm:$0xff] }
  0xec   :  { %1552 = vmatpush1.bf16.xpose.msra.mxu0 %v1551_v41  ;;  %1618 = vmatprep.subr.bf16.mxu1 %v1617_v42  ;;  %v1635_v41 = vpack.c.bf16 %v396_v35, %v390_v34  ;;  %v1571_v42 = vpack.c.bf16 %v208_v36, %v202_v33  ;;  %v1573_v44 = vpack.c.bf16 %v221_v40, %v215_v39  ;;  %v260_v34 = vld [vmem:[#allocation5 + $0x610] sm:$0xff]  ;;  %v266_v35 = vld [vmem:[#allocation5 + $0x640] sm:$0xff]  ;;  %v279_v39 = vld [vmem:[#allocation5 + $0x6a8] sm:$0xff] }
  0xed   :  { %1554 = vmatprep.subr.bf16.mxu0 %v1553_v43  ;;  %v1637_v43 = vpack.c.bf16 %v409_v38, %v403_v37  ;;  %v450_v36 = vld [vmem:[#allocation5 + $0xc00] sm:$0xff]  ;;  %v456_v37 = vld [vmem:[#allocation5 + $0xc30] sm:$0xff]  ;;  %v273_v38 = vld [vmem:[#allocation5 + $0x678] sm:$0xff] }
  0xee   :  { %v463_v40 = vld [vmem:[#allocation5 + $0xc68] sm:$0xff] }
  0xf3   :  { %1620 = vmatpush1.bf16.xpose.msra.mxu1 %v1619_v52  ;;  %v233_v52 = vld [vmem:[#allocation5 + $0x538] sm:$0xff] }
  0xf4   :  { %1556 = vmatpush1.bf16.xpose.msra.mxu0 %v1555_v53  ;;  %1622 = vmatprep.subr.bf16.mxu1 %v1621_v54  ;;  %v1639_v53 = vpack.c.bf16 %v408_v47, %v402_v46  ;;  %v1575_v54 = vpack.c.bf16 %v220_v48, %v214_v45  ;;  %v1577_v56 = vpack.c.bf16 %v233_v52, %v227_v51  ;;  %v65_v45 = vld [vmem:[#allocation2 + $0x58] sm:$0xff]  ;;  %v64_v48 = vld [vmem:[#allocation2 + $0x50] sm:$0xff]  ;;  %v462_v51 = vld [vmem:[#allocation5 + $0xc60] sm:$0xff] }
  0xf5   :  { %1558 = vmatprep.subr.bf16.mxu0 %v1557_v55  ;;  %v1641_v55 = vpack.c.bf16 %v421_v50, %v415_v49  ;;  %v1657_v46 = vpack.c.bf16 %v279_v39, %v273_v38  ;;  %v272_v49 = vld [vmem:[#allocation5 + $0x670] sm:$0xff]  ;;  %v278_v50 = vld [vmem:[#allocation5 + $0x6a0] sm:$0xff]  ;;  %v339_v38 = vld [vmem:[#allocation5 + $0x888] sm:$0xff] }
  0xf6   :  { %v468_v52 = vld [vmem:[#allocation5 + $0xc90] sm:$0xff]  ;;  %v523_v39 = vld [vmem:[#allocation5 + $0xe48] sm:$0xff] }
  0xfb   :  { %1624 = vmatpush1.bf16.xpose.msra.mxu1 %v1623_v0  ;;  %v245_v0 = vld [vmem:[#allocation5 + $0x598] sm:$0xff] }
  0xfc   :  { %1560 = vmatpush1.bf16.xpose.msra.mxu0 %v1559_v1  ;;  %1626 = vmatprep.subr.bf16.mxu1 %v1625_v2  ;;  %v1643_v1 = vpack.c.bf16 %v420_v59, %v414_v58  ;;  %v1579_v2 = vpack.c.bf16 %v232_v60, %v226_v57  ;;  %v1581_v4 = vpack.c.bf16 %v245_v0, %v239_v63  ;;  %v284_v60 = vld [vmem:[#allocation5 + $0x6d0] sm:$0xff]  ;;  %v303_v0 = vld [vmem:[#allocation5 + $0x768] sm:$0xff] }
  0xfd   :  { %1562 = vmatprep.subr.bf16.mxu0 %v1561_v3  ;;  %v1645_v3 = vpack.c.bf16 %v433_v62, %v427_v61  ;;  %v1659_v57 = vpack.c.bf16 %v278_v50, %v272_v49  ;;  %v290_v61 = vld [vmem:[#allocation5 + $0x700] sm:$0xff]  ;;  %v480_v63 = vld [vmem:[#allocation5 + $0xcf0] sm:$0xff]  ;;  %v345_v49 = vld [vmem:[#allocation5 + $0x8b8] sm:$0xff] }
  0xfe   :  { %v474_v62 = vld [vmem:[#allocation5 + $0xcc0] sm:$0xff]  ;;  %v351_v50 = vld [vmem:[#allocation5 + $0x8e8] sm:$0xff] }
 0x103   :  { %1628 = vmatpush1.bf16.xpose.msra.mxu1 %v1627_v12  ;;  %v257_v12 = vld [vmem:[#allocation5 + $0x5f8] sm:$0xff] }
 0x104   :  { %1564 = vmatpush1.bf16.xpose.msra.mxu0 %v1563_v13  ;;  %1630 = vmatprep.subr.bf16.mxu1 %v1629_v16  ;;  %v1647_v13 = vpack.c.bf16 %v432_v7, %v426_v6  ;;  %v1583_v16 = vpack.c.bf16 %v244_v8, %v238_v5  ;;  %v1585_v18 = vpack.c.bf16 %v257_v12, %v251_v11  ;;  %v486_v6 = vld [vmem:[#allocation5 + $0xd20] sm:$0xff]  ;;  %v492_v7 = vld [vmem:[#allocation5 + $0xd50] sm:$0xff]  ;;  %v309_v8 = vld [vmem:[#allocation5 + $0x798] sm:$0xff] }
 0x105   :  { %1566 = vmatprep.subr.bf16.mxu0 %v1565_v17  ;;  %v1649_v17 = vpack.c.bf16 %v445_v10, %v439_v9  ;;  %v315_v9 = vld [vmem:[#allocation5 + $0x7c8] sm:$0xff]  ;;  %v505_v11 = vld [vmem:[#allocation5 + $0xdb8] sm:$0xff] }
 0x106   :  { %v499_v10 = vld [vmem:[#allocation5 + $0xd88] sm:$0xff] }
 0x10b   :  { %1632 = vmatpush1.bf16.xpose.msra.mxu1 %v1631_v28  ;;  %v457_v28 = vld [vmem:[#allocation5 + $0xc38] sm:$0xff] }
 0x10c   :  { %1568 = vmatpush1.bf16.xpose.msra.mxu0 %v1567_v29  ;;  %1634 = vmatprep.subr.bf16.mxu1 %v1633_v31  ;;  %v1651_v29 = vpack.c.bf16 %v444_v22, %v438_v21  ;;  %v1587_v31 = vpack.c.bf16 %v256_v23, %v250_v19  ;;  %v1781_v33 = vpack.c.bf16 %v457_v28, %v451_v27  ;;  %v314_v19 = vld [vmem:[#allocation5 + $0x7c0] sm:$0xff]  ;;  %v504_v22 = vld [vmem:[#allocation5 + $0xdb0] sm:$0xff]  ;;  %v321_v23 = vld [vmem:[#allocation5 + $0x7f8] sm:$0xff] }
 0x10d   :  { %1570 = vmatprep.subr.bf16.mxu0 %v1569_v32  ;;  %v1653_v32 = vpack.c.bf16 %v267_v25, %v261_v24  ;;  %v498_v21 = vld [vmem:[#allocation5 + $0xd80] sm:$0xff]  ;;  %v327_v24 = vld [vmem:[#allocation5 + $0x828] sm:$0xff]  ;;  %v517_v27 = vld [vmem:[#allocation5 + $0xe18] sm:$0xff] }
 0x10e   :  { %v511_v25 = vld [vmem:[#allocation5 + $0xde8] sm:$0xff] }
 0x113   :  { %1636 = vmatpush1.bf16.xpose.msra.mxu1 %v1635_v41  ;;  %v469_v41 = vld [vmem:[#allocation5 + $0xc98] sm:$0xff] }
 0x114   :  { %1572 = vmatpush1.bf16.xpose.msra.mxu0 %v1571_v42  ;;  %1638 = vmatprep.subr.bf16.mxu1 %v1637_v43  ;;  %v1655_v42 = vpack.c.bf16 %v266_v35, %v260_v34  ;;  %v58_v43 = vld [vmem:[#allocation2 + $0x20] sm:$0xff]  ;;  %v1785_v47 = vpack.c.bf16 %v469_v41, %v463_v40  ;;  %v529_v40 = vld [vmem:[#allocation5 + $0xe78] sm:$0xff] }
 0x115   :  { %1574 = vmatprep.subr.bf16.mxu0 %v1573_v44  ;;  %v1783_v44 = vpack.c.bf16 %v456_v37, %v450_v36  ;;  %v326_v34 = vld [vmem:[#allocation5 + $0x820] sm:$0xff]  ;;  %v516_v36 = vld [vmem:[#allocation5 + $0xe10] sm:$0xff]  ;;  %v333_v37 = vld [vmem:[#allocation5 + $0x858] sm:$0xff] }
 0x116   :  { %v510_v35 = vld [vmem:[#allocation5 + $0xde0] sm:$0xff] }
 0x11b   :  { %1640 = vmatpush1.bf16.xpose.msra.mxu1 %v1639_v53  ;;  %v285_v53 = vld [vmem:[#allocation5 + $0x6d8] sm:$0xff] }
 0x11c   :  { %1576 = vmatpush1.bf16.xpose.msra.mxu0 %v1575_v54  ;;  %1642 = vmatprep.subr.bf16.mxu1 %v1641_v55  ;;  %v291_v54 = vld [vmem:[#allocation5 + $0x708] sm:$0xff] }
 0x11d   :  { %1578 = vmatprep.subr.bf16.mxu0 %v1577_v56  ;;  %v475_v55 = vld [vmem:[#allocation5 + $0xcc8] sm:$0xff]  ;;  %v481_v56 = vld [vmem:[#allocation5 + $0xcf8] sm:$0xff]  ;;  %v1661_v58 = vpack.c.bf16 %v291_v54, %v285_v53 }
 0x11e   :  { %v1789_v59 = vpack.c.bf16 %v481_v56, %v475_v55  ;;  %v1681_v55 = vpack.c.bf16 %v351_v50, %v345_v49  ;;  %v595_v49 = vld [vmem:[#allocation5 + $0x1088] sm:$0xff]  ;;  %v601_v50 = vld [vmem:[#allocation5 + $0x10b8] sm:$0xff] }
 0x123   :  { %1644 = vmatpush1.bf16.xpose.msra.mxu1 %v1643_v1  ;;  %v487_v1 = vld [vmem:[#allocation5 + $0xd28] sm:$0xff] }
 0x124   :  { %1580 = vmatpush1.bf16.xpose.msra.mxu0 %v1579_v2  ;;  %1646 = vmatprep.subr.bf16.mxu1 %v1645_v3  ;;  %v493_v2 = vld [vmem:[#allocation5 + $0xd58] sm:$0xff]  ;;  %v1791_v3 = vpack.c.bf16 %v480_v63, %v474_v62  ;;  %v547_v62 = vld [vmem:[#allocation5 + $0xf08] sm:$0xff] }
 0x125   :  { %1582 = vmatprep.subr.bf16.mxu0 %v1581_v4  ;;  %v1793_v5 = vpack.c.bf16 %v493_v2, %v487_v1  ;;  %v553_v63 = vld [vmem:[#allocation5 + $0xf38] sm:$0xff] }
 0x126   :  { %v1813_v2 = vpack.c.bf16 %v553_v63, %v547_v62  ;;  %v607_v62 = vld [vmem:[#allocation5 + $0x10e8] sm:$0xff]  ;;  %v613_v63 = vld [vmem:[#allocation5 + $0x1118] sm:$0xff] }
 0x12b   :  { %1648 = vmatpush1.bf16.xpose.msra.mxu1 %v1647_v13  ;;  %v1795_v13 = vpack.c.bf16 %v492_v7, %v486_v6  ;;  %v559_v6 = vld [vmem:[#allocation5 + $0xf68] sm:$0xff]  ;;  %v565_v7 = vld [vmem:[#allocation5 + $0xf98] sm:$0xff] }
 0x12c   :  { %1584 = vmatpush1.bf16.xpose.msra.mxu0 %v1583_v16  ;;  %1650 = vmatprep.subr.bf16.mxu1 %v1649_v17  ;;  %v1669_v16 = vpack.c.bf16 %v315_v9, %v309_v8  ;;  %v1797_v17 = vpack.c.bf16 %v505_v11, %v499_v10  ;;  %v1817_v11 = vpack.c.bf16 %v565_v7, %v559_v6  ;;  %v619_v6 = vld [vmem:[#allocation5 + $0x1148] sm:$0xff]  ;;  %v625_v7 = vld [vmem:[#allocation5 + $0x1178] sm:$0xff] }
 0x12d   :  { %1586 = vmatprep.subr.bf16.mxu0 %v1585_v18  ;;  %v308_v18 = vld [vmem:[#allocation5 + $0x790] sm:$0xff] }
 0x12e   :  { %v1671_v28 = vpack.c.bf16 %v314_v19, %v308_v18  ;;  %v381_v18 = vld [vmem:[#allocation5 + $0x9d8] sm:$0xff]  ;;  %v387_v19 = vld [vmem:[#allocation5 + $0xa08] sm:$0xff] }
 0x133   :  { %1652 = vmatpush1.bf16.xpose.msra.mxu1 %v1651_v29  ;;  %v1799_v29 = vpack.c.bf16 %v504_v22, %v498_v21  ;;  %v571_v21 = vld [vmem:[#allocation5 + $0xfc8] sm:$0xff]  ;;  %v577_v22 = vld [vmem:[#allocation5 + $0xff8] sm:$0xff] }
 0x134   :  { %1588 = vmatpush1.bf16.xpose.msra.mxu0 %v1587_v31  ;;  %1654 = vmatprep.subr.bf16.mxu1 %v1653_v32  ;;  %v1673_v31 = vpack.c.bf16 %v327_v24, %v321_v23  ;;  %v1801_v32 = vpack.c.bf16 %v517_v27, %v511_v25  ;;  %v1693_v25 = vpack.c.bf16 %v387_v19, %v381_v18  ;;  %v441_v18 = vld [vmem:[#allocation5 + $0xbb8] sm:$0xff]  ;;  %v447_v19 = vld [vmem:[#allocation5 + $0xbe8] sm:$0xff] }
 0x135   :  { %1782 = vmatprep.subr.bf16.mxu0 %v1781_v33  ;;  %v320_v33 = vld [vmem:[#allocation5 + $0x7f0] sm:$0xff]  ;;  %v1821_v27 = vpack.c.bf16 %v577_v22, %v571_v21  ;;  %v631_v21 = vld [vmem:[#allocation5 + $0x11a8] sm:$0xff]  ;;  %v637_v22 = vld [vmem:[#allocation5 + $0x11d8] sm:$0xff] }
 0x136   :  { %v1675_v41 = vpack.c.bf16 %v326_v34, %v320_v33  ;;  %v393_v33 = vld [vmem:[#allocation5 + $0xa38] sm:$0xff]  ;;  %v399_v34 = vld [vmem:[#allocation5 + $0xa68] sm:$0xff] }
 0x13a   :  { %970 = vmatmul.mubr.f32.vlgmr.msra.gmra.mrb[4].mxu1 %v2233_v20  ;;  %v1787_v20 = vpack.c.bf16 %v468_v52, %v462_v51  ;;  %v535_v51 = vld [vmem:[#allocation5 + $0xea8] sm:$0xff]  ;;  %v541_v52 = vld [vmem:[#allocation5 + $0xed8] sm:$0xff] }
 0x13b   :  { %893 = vmatmul.mubr.f32.vlgmr.msra.gmra.mrb[0].mxu0 %v58_v43  ;;  %1656 = vmatpush1.bf16.xpose.msra.mxu1 %v1655_v42  ;;  %v1803_v42 = vpack.c.bf16 %v516_v36, %v510_v35  ;;  %v1677_v43 = vpack.c.bf16 %v339_v38, %v333_v37  ;;  %v1809_v56 = vpack.c.bf16 %v541_v52, %v535_v51  ;;  %v583_v35 = vld [vmem:[#allocation5 + $0x1028] sm:$0xff]  ;;  %v589_v36 = vld [vmem:[#allocation5 + $0x1058] sm:$0xff] }
 0x13c   :  { %1784 = vmatpush1.bf16.xpose.msra.mxu0 %v1783_v44  ;;  %898 = vmatprep.mubr.f32.mxu0 %v65_v45  ;;  %v1805_v44 = vpack.c.bf16 %v529_v40, %v523_v39  ;;  %v332_v45 = vld [vmem:[#allocation5 + $0x850] sm:$0xff]  ;;  %v1697_v39 = vpack.c.bf16 %v399_v34, %v393_v33  ;;  %v1825_v40 = vpack.c.bf16 %v589_v36, %v583_v35  ;;  %v263_v33 = vld [vmem:[#allocation5 + $0x628] sm:$0xff]  ;;  %v269_v34 = vld [vmem:[#allocation5 + $0x658] sm:$0xff] }
 0x13d   :  { %1658 = vmatprep.subr.bf16.mxu1 %v1657_v46  ;;  %1786 = vmatprep.subr.bf16.mxu0 %v1785_v47  ;;  %v338_v46 = vld [vmem:[#allocation5 + $0x880] sm:$0xff]  ;;  %v453_v35 = vld [vmem:[#allocation5 + $0xc18] sm:$0xff]  ;;  %v459_v36 = vld [vmem:[#allocation5 + $0xc48] sm:$0xff] }
 0x13e   :  { %975 = vmatprep.mubr.f32.mxu1 %v2236_v26  ;;  %v297_v26 = vld [vmem:[#allocation5 + $0x738] sm:$0xff]  ;;  %v522_v47 = vld [vmem:[#allocation5 + $0xe40] sm:$0xff]  ;;  %v1679_v53 = vpack.c.bf16 %v338_v46, %v332_v45  ;;  %v588_v45 = vld [vmem:[#allocation5 + $0x1050] sm:$0xff] }
 0x13f   :  { %899 = vmatmul.mubr.f32.gmra.mrb[2].mxu0 %v64_v48  ;;  %976 = vmatmul.mubr.f32.gmra.mrb[6].mxu1 %v2238_v30  ;;  %v1663_v30 = vpack.c.bf16 %v290_v61, %v284_v60  ;;  %v1665_v4 = vpack.c.bf16 %v303_v0, %v297_v26  ;;  %v528_v48 = vld [vmem:[#allocation5 + $0xe70] sm:$0xff]  ;;  %v357_v60 = vld [vmem:[#allocation5 + $0x918] sm:$0xff]  ;;  %v363_v61 = vld [vmem:[#allocation5 + $0x948] sm:$0xff] }
 0x140   :  { %1046 = vmatprep.mubr.f32.mxu1 %v2230_v15  ;;  %1200 = vmatprep.mubr.f32.mxu0 %v2227_v14  ;;  %v296_v14 = vld [vmem:[#allocation5 + $0x730] sm:$0xff]  ;;  %v302_v15 = vld [vmem:[#allocation5 + $0x760] sm:$0xff]  ;;  %v1807_v54 = vpack.c.bf16 %v528_v48, %v522_v47  ;;  %v1685_v1 = vpack.c.bf16 %v363_v61, %v357_v60  ;;  %v405_v46 = vld [vmem:[#allocation5 + $0xa98] sm:$0xff] }
 0x141   :  { %v1667_v12 = vpack.c.bf16 %v302_v15, %v296_v14  ;;  %v369_v14 = vld [vmem:[#allocation5 + $0x978] sm:$0xff]  ;;  %v375_v15 = vld [vmem:[#allocation5 + $0x9a8] sm:$0xff] }
 0x142   :  { %v1689_v10 = vpack.c.bf16 %v375_v15, %v369_v14  ;;  %v411_v47 = vld [vmem:[#allocation5 + $0xac8] sm:$0xff]  ;;  %v417_v60 = vld [vmem:[#allocation5 + $0xaf8] sm:$0xff] }
 0x143   :  { %1660 = vmatpush1.bf16.xpose.msra.mxu1 %v1659_v57  ;;  %v344_v57 = vld [vmem:[#allocation5 + $0x8b0] sm:$0xff]  ;;  %v423_v61 = vld [vmem:[#allocation5 + $0xb28] sm:$0xff]  ;;  %v429_v14 = vld [vmem:[#allocation5 + $0xb58] sm:$0xff] }
 0x144   :  { %1788 = vmatpush1.bf16.xpose.msra.mxu0 %v1787_v20  ;;  %1662 = vmatprep.subr.bf16.mxu1 %v1661_v58  ;;  %v350_v20 = vld [vmem:[#allocation5 + $0x8e0] sm:$0xff]  ;;  %v435_v15 = vld [vmem:[#allocation5 + $0xb88] sm:$0xff] }
 0x145   :  { %1790 = vmatprep.subr.bf16.mxu0 %v1789_v59  ;;  %v534_v58 = vld [vmem:[#allocation5 + $0xea0] sm:$0xff]  ;;  %v540_v59 = vld [vmem:[#allocation5 + $0xed0] sm:$0xff]  ;;  %v1683_v26 = vpack.c.bf16 %v350_v20, %v344_v57 }
 0x146   :  { %v1811_v0 = vpack.c.bf16 %v540_v59, %v534_v58  ;;  %v404_v57 = vld [vmem:[#allocation5 + $0xa90] sm:$0xff]  ;;  %v410_v20 = vld [vmem:[#allocation5 + $0xac0] sm:$0xff] }
 0x147   :  { %v594_v58 = vld [vmem:[#allocation5 + $0x1080] sm:$0xff]  ;;  %v600_v59 = vld [vmem:[#allocation5 + $0x10b0] sm:$0xff] }
 0x14b   :  { %1664 = vmatpush1.bf16.xpose.msra.mxu1 %v1663_v30  ;;  %v356_v30 = vld [vmem:[#allocation5 + $0x910] sm:$0xff] }
 0x14c   :  { %1792 = vmatpush1.bf16.xpose.msra.mxu0 %v1791_v3  ;;  %1666 = vmatprep.subr.bf16.mxu1 %v1665_v4  ;;  %v362_v3 = vld [vmem:[#allocation5 + $0x940] sm:$0xff] }
 0x14d   :  { %1794 = vmatprep.subr.bf16.mxu0 %v1793_v5  ;;  %v546_v4 = vld [vmem:[#allocation5 + $0xf00] sm:$0xff]  ;;  %v552_v5 = vld [vmem:[#allocation5 + $0xf30] sm:$0xff]  ;;  %v1687_v8 = vpack.c.bf16 %v362_v3, %v356_v30 }
 0x14e   :  { %v1815_v9 = vpack.c.bf16 %v552_v5, %v546_v4  ;;  %v416_v30 = vld [vmem:[#allocation5 + $0xaf0] sm:$0xff]  ;;  %v422_v3 = vld [vmem:[#allocation5 + $0xb20] sm:$0xff] }
 0x14f   :  { %v606_v4 = vld [vmem:[#allocation5 + $0x10e0] sm:$0xff]  ;;  %v612_v5 = vld [vmem:[#allocation5 + $0x1110] sm:$0xff] }
 0x153   :  { %1668 = vmatpush1.bf16.xpose.msra.mxu1 %v1667_v12  ;;  %v368_v12 = vld [vmem:[#allocation5 + $0x970] sm:$0xff] }
 0x154   :  { %1796 = vmatpush1.bf16.xpose.msra.mxu0 %v1795_v13  ;;  %1670 = vmatprep.subr.bf16.mxu1 %v1669_v16  ;;  %v374_v13 = vld [vmem:[#allocation5 + $0x9a0] sm:$0xff] }
 0x155   :  { %1798 = vmatprep.subr.bf16.mxu0 %v1797_v17  ;;  %v558_v16 = vld [vmem:[#allocation5 + $0xf60] sm:$0xff]  ;;  %v564_v17 = vld [vmem:[#allocation5 + $0xf90] sm:$0xff]  ;;  %v1691_v23 = vpack.c.bf16 %v374_v13, %v368_v12 }
 0x156   :  { %v1819_v24 = vpack.c.bf16 %v564_v17, %v558_v16  ;;  %v428_v12 = vld [vmem:[#allocation5 + $0xb50] sm:$0xff]  ;;  %v434_v13 = vld [vmem:[#allocation5 + $0xb80] sm:$0xff] }
 0x157   :  { %v618_v16 = vld [vmem:[#allocation5 + $0x1140] sm:$0xff]  ;;  %v624_v17 = vld [vmem:[#allocation5 + $0x1170] sm:$0xff] }
 0x15b   :  { %1672 = vmatpush1.bf16.xpose.msra.mxu1 %v1671_v28  ;;  %v380_v28 = vld [vmem:[#allocation5 + $0x9d0] sm:$0xff] }
 0x15c   :  { %1800 = vmatpush1.bf16.xpose.msra.mxu0 %v1799_v29  ;;  %1674 = vmatprep.subr.bf16.mxu1 %v1673_v31  ;;  %v386_v29 = vld [vmem:[#allocation5 + $0xa00] sm:$0xff] }
 0x15d   :  { %1802 = vmatprep.subr.bf16.mxu0 %v1801_v32  ;;  %v570_v31 = vld [vmem:[#allocation5 + $0xfc0] sm:$0xff]  ;;  %v576_v32 = vld [vmem:[#allocation5 + $0xff0] sm:$0xff]  ;;  %v1695_v37 = vpack.c.bf16 %v386_v29, %v380_v28 }
 0x15e   :  { %v1823_v38 = vpack.c.bf16 %v576_v32, %v570_v31  ;;  %v440_v28 = vld [vmem:[#allocation5 + $0xbb0] sm:$0xff]  ;;  %v446_v29 = vld [vmem:[#allocation5 + $0xbe0] sm:$0xff] }
 0x15f   :  { %v630_v31 = vld [vmem:[#allocation5 + $0x11a0] sm:$0xff]  ;;  %v636_v32 = vld [vmem:[#allocation5 + $0x11d0] sm:$0xff] }
 0x163   :  { %1676 = vmatpush1.bf16.xpose.msra.mxu1 %v1675_v41  ;;  %v392_v41 = vld [vmem:[#allocation5 + $0xa30] sm:$0xff] }
 0x164   :  { %1804 = vmatpush1.bf16.xpose.msra.mxu0 %v1803_v42  ;;  %1678 = vmatprep.subr.bf16.mxu1 %v1677_v43  ;;  %v398_v42 = vld [vmem:[#allocation5 + $0xa60] sm:$0xff] }
 0x165   :  { %1806 = vmatprep.subr.bf16.mxu0 %v1805_v44  ;;  %v582_v43 = vld [vmem:[#allocation5 + $0x1020] sm:$0xff]  ;;  %v1699_v51 = vpack.c.bf16 %v398_v42, %v392_v41  ;;  %v268_v42 = vld [vmem:[#allocation5 + $0x650] sm:$0xff] }
 0x166   :  { %v1827_v52 = vpack.c.bf16 %v588_v45, %v582_v43  ;;  %v262_v41 = vld [vmem:[#allocation5 + $0x620] sm:$0xff]  ;;  %v452_v43 = vld [vmem:[#allocation5 + $0xc10] sm:$0xff] }
 0x167   :  { %v458_v45 = vld [vmem:[#allocation5 + $0xc40] sm:$0xff] }
 0x16b   :  { %1680 = vmatpush1.bf16.xpose.msra.mxu1 %v1679_v53  ;;  %v1701_v53 = vpack.c.bf16 %v411_v47, %v405_v46  ;;  %v275_v46 = vld [vmem:[#allocation5 + $0x688] sm:$0xff]  ;;  %v281_v47 = vld [vmem:[#allocation5 + $0x6b8] sm:$0xff] }
 0x16c   :  { %1808 = vmatpush1.bf16.xpose.msra.mxu0 %v1807_v54  ;;  %1682 = vmatprep.subr.bf16.mxu1 %v1681_v55  ;;  %v1829_v54 = vpack.c.bf16 %v601_v50, %v595_v49  ;;  %v465_v49 = vld [vmem:[#allocation5 + $0xc78] sm:$0xff]  ;;  %v471_v50 = vld [vmem:[#allocation5 + $0xca8] sm:$0xff] }
 0x16d   :  { %1810 = vmatprep.subr.bf16.mxu0 %v1809_v56 }
 0x173   :  { %1684 = vmatpush1.bf16.xpose.msra.mxu1 %v1683_v26  ;;  %v1703_v26 = vpack.c.bf16 %v410_v20, %v404_v57  ;;  %v2256_v57 = vld [vmem:[#allocation2 + $0x10] sm:$0xff]  ;;  %v2048_v20 = vld [vmem:[#allocation2] sm:$0xff] }
 0x174   :  { %1812 = vmatpush1.bf16.xpose.msra.mxu0 %v1811_v0  ;;  %1686 = vmatprep.subr.bf16.mxu1 %v1685_v1  ;;  %v1831_v0 = vpack.c.bf16 %v600_v59, %v594_v58  ;;  %v1705_v1 = vpack.c.bf16 %v423_v61, %v417_v60  ;;  %v274_v58 = vld [vmem:[#allocation5 + $0x680] sm:$0xff]  ;;  %v280_v59 = vld [vmem:[#allocation5 + $0x6b0] sm:$0xff] }
 0x175   :  { %1814 = vmatprep.subr.bf16.mxu0 %v1813_v2  ;;  %v1833_v2 = vpack.c.bf16 %v613_v63, %v607_v62  ;;  %v464_v60 = vld [vmem:[#allocation5 + $0xc70] sm:$0xff]  ;;  %v470_v61 = vld [vmem:[#allocation5 + $0xca0] sm:$0xff]  ;;  %v287_v62 = vld [vmem:[#allocation5 + $0x6e8] sm:$0xff] }
 0x176   :  { %v293_v63 = vld [vmem:[#allocation5 + $0x718] sm:$0xff] }
 0x17b   :  { %1688 = vmatpush1.bf16.xpose.msra.mxu1 %v1687_v8  ;;  %v1707_v8 = vpack.c.bf16 %v422_v3, %v416_v30  ;;  %v2262_v30 = vld [vmem:[#allocation2 + $0x40] sm:$0xff]  ;;  %v1723_v3 = vpack.c.bf16 %v280_v59, %v274_v58  ;;  %v341_v58 = vld [vmem:[#allocation5 + $0x898] sm:$0xff] }
 0x17c   :  { %1816 = vmatpush1.bf16.xpose.msra.mxu0 %v1815_v9  ;;  %1690 = vmatprep.subr.bf16.mxu1 %v1689_v10  ;;  %v1835_v9 = vpack.c.bf16 %v612_v5, %v606_v4  ;;  %v1709_v10 = vpack.c.bf16 %v435_v15, %v429_v14  ;;  %v2052_v4 = vld [vmem:[#allocation2 + $0x30] sm:$0xff]  ;;  %v2265_v5 = vld [vmem:[#allocation2 + $0x28] sm:$0xff]  ;;  %v1851_v14 = vpack.c.bf16 %v470_v61, %v464_v60  ;;  %v525_v59 = vld [vmem:[#allocation5 + $0xe58] sm:$0xff] }
 0x17d   :  { %1818 = vmatprep.subr.bf16.mxu0 %v1817_v11  ;;  %v1837_v11 = vpack.c.bf16 %v625_v7, %v619_v6  ;;  %v1725_v15 = vpack.c.bf16 %v293_v63, %v287_v62  ;;  %v2054_v6 = vld [vmem:[#allocation2 + $0x18] sm:$0xff]  ;;  %v531_v60 = vld [vmem:[#allocation5 + $0xe88] sm:$0xff] }
 0x183   :  { %1692 = vmatpush1.bf16.xpose.msra.mxu1 %v1691_v23  ;;  %v1711_v23 = vpack.c.bf16 %v434_v13, %v428_v12  ;;  %v299_v12 = vld [vmem:[#allocation5 + $0x748] sm:$0xff]  ;;  %v305_v13 = vld [vmem:[#allocation5 + $0x778] sm:$0xff] }
 0x184   :  { %1820 = vmatpush1.bf16.xpose.msra.mxu0 %v1819_v24  ;;  %1694 = vmatprep.subr.bf16.mxu1 %v1693_v25  ;;  %v1839_v24 = vpack.c.bf16 %v624_v17, %v618_v16  ;;  %v1713_v25 = vpack.c.bf16 %v447_v19, %v441_v18  ;;  %v489_v16 = vld [vmem:[#allocation5 + $0xd38] sm:$0xff]  ;;  %v495_v17 = vld [vmem:[#allocation5 + $0xd68] sm:$0xff] }
 0x185   :  { %1822 = vmatprep.subr.bf16.mxu0 %v1821_v27  ;;  %v1841_v27 = vpack.c.bf16 %v637_v22, %v631_v21  ;;  %v1729_v21 = vpack.c.bf16 %v305_v13, %v299_v12  ;;  %v1857_v22 = vpack.c.bf16 %v495_v17, %v489_v16  ;;  %v346_v12 = vld [vmem:[#allocation5 + $0x8c0] sm:$0xff]  ;;  %v352_v13 = vld [vmem:[#allocation5 + $0x8f0] sm:$0xff] }
 0x186   :  { %v536_v16 = vld [vmem:[#allocation5 + $0xeb0] sm:$0xff]  ;;  %v542_v17 = vld [vmem:[#allocation5 + $0xee0] sm:$0xff] }
 0x18b   :  { %1696 = vmatpush1.bf16.xpose.msra.mxu1 %v1695_v37  ;;  %v1715_v37 = vpack.c.bf16 %v446_v29, %v440_v28  ;;  %v311_v28 = vld [vmem:[#allocation5 + $0x7a8] sm:$0xff]  ;;  %v317_v29 = vld [vmem:[#allocation5 + $0x7d8] sm:$0xff] }
 0x18c   :  { %1824 = vmatpush1.bf16.xpose.msra.mxu0 %v1823_v38  ;;  %1698 = vmatprep.subr.bf16.mxu1 %v1697_v39  ;;  %v1843_v38 = vpack.c.bf16 %v636_v32, %v630_v31  ;;  %v1717_v39 = vpack.c.bf16 %v269_v34, %v263_v33  ;;  %v501_v31 = vld [vmem:[#allocation5 + $0xd98] sm:$0xff]  ;;  %v507_v32 = vld [vmem:[#allocation5 + $0xdc8] sm:$0xff] }
 0x18d   :  { %v2248_v44 = vpop.f32.mrb[0].mxu1  ;;  %1826 = vmatprep.subr.bf16.mxu0 %v1825_v40  ;;  %v1845_v40 = vpack.c.bf16 %v459_v36, %v453_v35  ;;  %v1733_v35 = vpack.c.bf16 %v317_v29, %v311_v28  ;;  %v1861_v36 = vpack.c.bf16 %v507_v32, %v501_v31  ;;  %v358_v28 = vld [vmem:[#allocation5 + $0x920] sm:$0xff]  ;;  %v364_v29 = vld [vmem:[#allocation5 + $0x950] sm:$0xff] }
 0x18e   :  { %v2250_v48 = vpop.f32.mrb[1].mxu1  ;;  %v548_v31 = vld [vmem:[#allocation5 + $0xf10] sm:$0xff]  ;;  %v554_v32 = vld [vmem:[#allocation5 + $0xf40] sm:$0xff] }
 0x191   :  { %v2252_v55 = vpop.f32.mrb[2].mxu1 }
 0x192   :  { %v2254_v56 = vpop.f32.mrb[3].mxu1 }
 0x193   :  { %1700 = vmatpush1.bf16.xpose.msra.mxu1 %v1699_v51  ;;  %v1719_v51 = vpack.c.bf16 %v268_v42, %v262_v41  ;;  %v323_v41 = vld [vmem:[#allocation5 + $0x808] sm:$0xff]  ;;  %v329_v42 = vld [vmem:[#allocation5 + $0x838] sm:$0xff] }
 0x194   :  { %1828 = vmatpush1.bf16.xpose.msra.mxu0 %v1827_v52  ;;  %1702 = vmatprep.subr.bf16.mxu1 %v1701_v53  ;;  %v1847_v52 = vpack.c.bf16 %v458_v45, %v452_v43  ;;  %v1721_v53 = vpack.c.bf16 %v281_v47, %v275_v46  ;;  %v513_v43 = vld [vmem:[#allocation5 + $0xdf8] sm:$0xff]  ;;  %v519_v45 = vld [vmem:[#allocation5 + $0xe28] sm:$0xff] }
 0x195   :  { %1830 = vmatprep.subr.bf16.mxu0 %v1829_v54  ;;  %v1849_v54 = vpack.c.bf16 %v471_v50, %v465_v49  ;;  %v1737_v49 = vpack.c.bf16 %v329_v42, %v323_v41  ;;  %v1865_v50 = vpack.c.bf16 %v519_v45, %v513_v43  ;;  %v370_v41 = vld [vmem:[#allocation5 + $0x980] sm:$0xff]  ;;  %v376_v42 = vld [vmem:[#allocation5 + $0x9b0] sm:$0xff]  ;;  %v644_v45 = vlaneseq }
 0x196   :  { %v560_v43 = vld [vmem:[#allocation5 + $0xf70] sm:$0xff] }
 0x19b   :  { %1704 = vmatpush1.bf16.xpose.msra.mxu1 %v1703_v26  ;;  %v2259_v26 = vld [vmem:[#allocation2 + $0x48] sm:$0xff] }
 0x19c   :  { %1832 = vmatpush1.bf16.xpose.msra.mxu0 %v1831_v0  ;;  %1706 = vmatprep.subr.bf16.mxu1 %v1705_v1  ;;  %v477_v0 = vld [vmem:[#allocation5 + $0xcd8] sm:$0xff]  ;;  %v483_v1 = vld [vmem:[#allocation5 + $0xd08] sm:$0xff] }
 0x19d   :  { %1834 = vmatprep.subr.bf16.mxu0 %v1833_v2  ;;  %v2050_v2 = vld [vmem:[#allocation2 + $0x38] sm:$0xff]  ;;  %v1853_v7 = vpack.c.bf16 %v483_v1, %v477_v0  ;;  %v1869_v0 = vpack.c.bf16 %v531_v60, %v525_v59  ;;  %v334_v1 = vld [vmem:[#allocation5 + $0x860] sm:$0xff]  ;;  %v388_v60 = vld [vmem:[#allocation5 + $0xa10] sm:$0xff] }
 0x19e   :  { %v382_v59 = vld [vmem:[#allocation5 + $0x9e0] sm:$0xff] }
 0x1a3   :  { %1708 = vmatpush1.bf16.xpose.msra.mxu1 %v1707_v8  ;;  %v286_v8 = vld [vmem:[#allocation5 + $0x6e0] sm:$0xff] }
 0x1a4   :  { %1836 = vmatpush1.bf16.xpose.msra.mxu0 %v1835_v9  ;;  %1710 = vmatprep.subr.bf16.mxu1 %v1709_v10  ;;  %v292_v9 = vld [vmem:[#allocation5 + $0x710] sm:$0xff] }
 0x1a5   :  { %1838 = vmatprep.subr.bf16.mxu0 %v1837_v11  ;;  %v476_v10 = vld [vmem:[#allocation5 + $0xcd0] sm:$0xff]  ;;  %v482_v11 = vld [vmem:[#allocation5 + $0xd00] sm:$0xff]  ;;  %v1727_v18 = vpack.c.bf16 %v292_v9, %v286_v8 }
 0x1a6   :  { %v1855_v19 = vpack.c.bf16 %v482_v11, %v476_v10 }
 0x1ab   :  { %1712 = vmatpush1.bf16.xpose.msra.mxu1 %v1711_v23  ;;  %v298_v23 = vld [vmem:[#allocation5 + $0x740] sm:$0xff] }
 0x1ac   :  { %1840 = vmatpush1.bf16.xpose.msra.mxu0 %v1839_v24  ;;  %1714 = vmatprep.subr.bf16.mxu1 %v1713_v25  ;;  %v304_v24 = vld [vmem:[#allocation5 + $0x770] sm:$0xff] }
 0x1ad   :  { %1842 = vmatprep.subr.bf16.mxu0 %v1841_v27  ;;  %v488_v25 = vld [vmem:[#allocation5 + $0xd30] sm:$0xff]  ;;  %v494_v27 = vld [vmem:[#allocation5 + $0xd60] sm:$0xff]  ;;  %v1731_v33 = vpack.c.bf16 %v304_v24, %v298_v23  ;;  %v1747_v23 = vpack.c.bf16 %v352_v13, %v346_v12  ;;  %v1875_v24 = vpack.c.bf16 %v542_v17, %v536_v16 }
 0x1ae   :  { %v1859_v34 = vpack.c.bf16 %v494_v27, %v488_v25  ;;  %v400_v12 = vld [vmem:[#allocation5 + $0xa70] sm:$0xff]  ;;  %v590_v17 = vld [vmem:[#allocation5 + $0x1060] sm:$0xff] }
 0x1af   :  { %v584_v13 = vld [vmem:[#allocation5 + $0x1030] sm:$0xff] }
 0x1b3   :  { %1716 = vmatpush1.bf16.xpose.msra.mxu1 %v1715_v37  ;;  %v310_v37 = vld [vmem:[#allocation5 + $0x7a0] sm:$0xff] }
 0x1b4   :  { %1844 = vmatpush1.bf16.xpose.msra.mxu0 %v1843_v38  ;;  %1718 = vmatprep.subr.bf16.mxu1 %v1717_v39  ;;  %v316_v38 = vld [vmem:[#allocation5 + $0x7d0] sm:$0xff] }
 0x1b5   :  { %1846 = vmatprep.subr.bf16.mxu0 %v1845_v40  ;;  %v500_v39 = vld [vmem:[#allocation5 + $0xd90] sm:$0xff]  ;;  %v506_v40 = vld [vmem:[#allocation5 + $0xdc0] sm:$0xff]  ;;  %v1735_v46 = vpack.c.bf16 %v316_v38, %v310_v37  ;;  %v1751_v37 = vpack.c.bf16 %v364_v29, %v358_v28  ;;  %v1879_v38 = vpack.c.bf16 %v554_v32, %v548_v31  ;;  %v1891_v31 = vpack.c.bf16 %v590_v17, %v584_v13 }
 0x1b6   :  { %v1863_v47 = vpack.c.bf16 %v506_v40, %v500_v39  ;;  %v442_v13 = vld [vmem:[#allocation5 + $0xbc0] sm:$0xff]  ;;  %v632_v17 = vld [vmem:[#allocation5 + $0x11b0] sm:$0xff] }
 0x1ba   :  { %1047 = vmatmul.mubr.f32.vlgmr.msra.gmra.mrb[4].mxu1 %v2256_v57 }
 0x1bb   :  { %1720 = vmatpush1.bf16.xpose.msra.mxu1 %v1719_v51  ;;  %1201 = vmatmul.mubr.f32.vlgmr.msra.gmra.mrb[4].mxu0 %v2048_v20  ;;  %v322_v51 = vld [vmem:[#allocation5 + $0x800] sm:$0xff]  ;;  %v335_v20 = vld [vmem:[#allocation5 + $0x868] sm:$0xff] }
 0x1bc   :  { %1848 = vmatpush1.bf16.xpose.msra.mxu0 %v1847_v52  ;;  %1722 = vmatprep.subr.bf16.mxu1 %v1721_v53  ;;  %v328_v52 = vld [vmem:[#allocation5 + $0x830] sm:$0xff]  ;;  %v1741_v63 = vpack.c.bf16 %v341_v58, %v335_v20  ;;  %v2268_v20 = vshrl.u32 %v644_v45, 7  ;;  %v615_v45 = vld [vmem:[#allocation5 + $0x1128] sm:$0xff] }
 0x1bd   :  { %1850 = vmatprep.subr.bf16.mxu0 %v1849_v54  ;;  %1052 = vmatprep.mubr.f32.mxu1 %v2259_v26  ;;  %v512_v53 = vld [vmem:[#allocation5 + $0xdf0] sm:$0xff]  ;;  %v518_v54 = vld [vmem:[#allocation5 + $0xe20] sm:$0xff]  ;;  %v1739_v61 = vpack.c.bf16 %v328_v52, %v322_v51  ;;  %v579_v51 = vld [vmem:[#allocation5 + $0x1008] sm:$0xff]  ;;  %v1755_v52 = vpack.c.bf16 %v376_v42, %v370_v41 }
 0x1be   :  { %1206 = vmatprep.mubr.f32.mxu0 %v2050_v2  ;;  %1053 = vmatmul.mubr.f32.gmra.mrb[6].mxu1 %v2262_v30  ;;  %v1867_v62 = vpack.c.bf16 %v518_v54, %v512_v53  ;;  %v340_v2 = vld [vmem:[#allocation5 + $0x890] sm:$0xff]  ;;  %v602_v41 = vld [vmem:[#allocation5 + $0x10c0] sm:$0xff]  ;;  %v419_v42 = vld [vmem:[#allocation5 + $0xb08] sm:$0xff] }
 0x1bf   :  { %1207 = vmatmul.mubr.f32.gmra.mrb[6].mxu0 %v2052_v4  ;;  %1123 = vmatprep.mubr.f32.mxu1 %v2265_v5  ;;  %v530_v4 = vld [vmem:[#allocation5 + $0xe80] sm:$0xff]  ;;  %v1743_v8 = vpack.c.bf16 %v340_v2, %v334_v1  ;;  %v401_v1 = vld [vmem:[#allocation5 + $0xa78] sm:$0xff] }
 0x1c0   :  { %1277 = vmatprep.mubr.f32.mxu0 %v2054_v6  ;;  %v537_v6 = vld [vmem:[#allocation5 + $0xeb8] sm:$0xff]  ;;  %v2271_v2 = vld [vmem:[#allocation7] sm:$0x3f] }
 0x1c3   :  { %1724 = vmatpush1.bf16.xpose.msra.mxu1 %v1723_v3  ;;  %v524_v3 = vld [vmem:[#allocation5 + $0xe50] sm:$0xff] }
 0x1c4   :  { %1852 = vmatpush1.bf16.xpose.msra.mxu0 %v1851_v14  ;;  %1726 = vmatprep.subr.bf16.mxu1 %v1725_v15  ;;  %v347_v14 = vld [vmem:[#allocation5 + $0x8c8] sm:$0xff]  ;;  %v353_v15 = vld [vmem:[#allocation5 + $0x8f8] sm:$0xff]  ;;  %v1871_v9 = vpack.c.bf16 %v530_v4, %v524_v3  ;;  %v650_v3 = vsub.s32 1, %v2268_v20 }
 0x1c5   :  { %1854 = vmatprep.subr.bf16.mxu0 %v1853_v7  ;;  %v543_v7 = vld [vmem:[#allocation5 + $0xee8] sm:$0xff]  ;;  %v1745_v10 = vpack.c.bf16 %v353_v15, %v347_v14  ;;  %v585_v4 = vld [vmem:[#allocation5 + $0x1038] sm:$0xff]  ;;  %v1759_v15 = vpack.c.bf16 %v388_v60, %v382_v59 }
 0x1c6   :  { %v1873_v11 = vpack.c.bf16 %v543_v7, %v537_v6  ;;  %v591_v14 = vld [vmem:[#allocation5 + $0x1068] sm:$0xff]  ;;  %v621_v59 = vld [vmem:[#allocation5 + $0x1158] sm:$0xff] }
 0x1c7   :  { %v627_v60 = vld [vmem:[#allocation5 + $0x1188] sm:$0xff] }
 0x1cb   :  { %1728 = vmatpush1.bf16.xpose.msra.mxu1 %v1727_v18  ;;  %v359_v18 = vld [vmem:[#allocation5 + $0x928] sm:$0xff] }
 0x1cc   :  { %1856 = vmatpush1.bf16.xpose.msra.mxu0 %v1855_v19  ;;  %1730 = vmatprep.subr.bf16.mxu1 %v1729_v21  ;;  %v365_v19 = vld [vmem:[#allocation5 + $0x958] sm:$0xff] }
 0x1cd   :  { %1858 = vmatprep.subr.bf16.mxu0 %v1857_v22  ;;  %v549_v21 = vld [vmem:[#allocation5 + $0xf18] sm:$0xff]  ;;  %v555_v22 = vld [vmem:[#allocation5 + $0xf48] sm:$0xff]  ;;  %v1749_v25 = vpack.c.bf16 %v365_v19, %v359_v18 }
 0x1ce   :  { %v1877_v27 = vpack.c.bf16 %v555_v22, %v549_v21  ;;  %v407_v18 = vld [vmem:[#allocation5 + $0xaa8] sm:$0xff]  ;;  %v413_v19 = vld [vmem:[#allocation5 + $0xad8] sm:$0xff] }
 0x1cf   :  { %v1765_v32 = vpack.c.bf16 %v413_v19, %v407_v18  ;;  %v638_v18 = vld [vmem:[#allocation5 + $0x11e0] sm:$0xff]  ;;  %v455_v19 = vld [vmem:[#allocation5 + $0xc28] sm:$0xff] }
 0x1d3   :  { %1732 = vmatpush1.bf16.xpose.msra.mxu1 %v1731_v33  ;;  %v371_v33 = vld [vmem:[#allocation5 + $0x988] sm:$0xff] }
 0x1d4   :  { %1860 = vmatpush1.bf16.xpose.msra.mxu0 %v1859_v34  ;;  %1734 = vmatprep.subr.bf16.mxu1 %v1733_v35  ;;  %v377_v34 = vld [vmem:[#allocation5 + $0x9b8] sm:$0xff] }
 0x1d5   :  { %1862 = vmatprep.subr.bf16.mxu0 %v1861_v36  ;;  %v561_v35 = vld [vmem:[#allocation5 + $0xf78] sm:$0xff]  ;;  %v567_v36 = vld [vmem:[#allocation5 + $0xfa8] sm:$0xff]  ;;  %v1753_v39 = vpack.c.bf16 %v377_v34, %v371_v33 }
 0x1d6   :  { %v1881_v40 = vpack.c.bf16 %v567_v36, %v561_v35 }
 0x1db   :  { %1736 = vmatpush1.bf16.xpose.msra.mxu1 %v1735_v46  ;;  %v566_v46 = vld [vmem:[#allocation5 + $0xfa0] sm:$0xff] }
 0x1dc   :  { %1864 = vmatpush1.bf16.xpose.msra.mxu0 %v1863_v47  ;;  %1738 = vmatprep.subr.bf16.mxu1 %v1737_v49  ;;  %v383_v47 = vld [vmem:[#allocation5 + $0x9e8] sm:$0xff]  ;;  %v389_v49 = vld [vmem:[#allocation5 + $0xa18] sm:$0xff]  ;;  %v1883_v53 = vpack.c.bf16 %v566_v46, %v560_v43 }
 0x1dd   :  { %1866 = vmatprep.subr.bf16.mxu0 %v1865_v50  ;;  %v573_v50 = vld [vmem:[#allocation5 + $0xfd8] sm:$0xff]  ;;  %v1757_v54 = vpack.c.bf16 %v389_v49, %v383_v47 }
 0x1de   :  { %v1885_v58 = vpack.c.bf16 %v579_v51, %v573_v50  ;;  %v609_v43 = vld [vmem:[#allocation5 + $0x10f8] sm:$0xff]  ;;  %v418_v50 = vld [vmem:[#allocation5 + $0xb00] sm:$0xff]  ;;  %v424_v51 = vld [vmem:[#allocation5 + $0xb30] sm:$0xff] }
 0x1df   :  { %v1897_v49 = vpack.c.bf16 %v615_v45, %v609_v43  ;;  %v490_v43 = vld [vmem:[#allocation5 + $0xd40] sm:$0xff]  ;;  %v503_v45 = vld [vmem:[#allocation5 + $0xda8] sm:$0xff] }
 0x1e3   :  { %1740 = vmatpush1.bf16.xpose.msra.mxu1 %v1739_v61  ;;  %v572_v61 = vld [vmem:[#allocation5 + $0xfd0] sm:$0xff] }
 0x1e4   :  { %1868 = vmatpush1.bf16.xpose.msra.mxu0 %v1867_v62  ;;  %1742 = vmatprep.subr.bf16.mxu1 %v1741_v63  ;;  %v646_v62 = vsub.s32 0, %v2268_v20  ;;  %v578_v63 = vld [vmem:[#allocation5 + $0x1000] sm:$0xff] }
 0x1e5   :  { %1870 = vmatprep.subr.bf16.mxu0 %v1869_v0  ;;  %v395_v0 = vld [vmem:[#allocation5 + $0xa48] sm:$0xff]  ;;  %v1887_v6 = vpack.c.bf16 %v578_v63, %v572_v61  ;;  %v1771_v61 = vpack.c.bf16 %v424_v51, %v418_v50  ;;  %v521_v51 = vld [vmem:[#allocation5 + $0xe38] sm:$0xff] }
 0x1e6   :  { %v1761_v7 = vpack.c.bf16 %v401_v1, %v395_v0  ;;  %v1901_v0 = vpack.c.bf16 %v627_v60, %v621_v59  ;;  %v430_v1 = vld [vmem:[#allocation5 + $0xb60] sm:$0xff]  ;;  %v515_v50 = vld [vmem:[#allocation5 + $0xe08] sm:$0xff]  ;;  %v533_v60 = vld [vmem:[#allocation5 + $0xe98] sm:$0xff] }
 0x1e7   :  { %v527_v59 = vld [vmem:[#allocation5 + $0xe68] sm:$0xff] }
 0x1eb   :  { %1744 = vmatpush1.bf16.xpose.msra.mxu1 %v1743_v8  ;;  %v647_v8 = vrot.slane %v2271_v2, %v646_v62 }
 0x1ec   :  { %1872 = vmatpush1.bf16.xpose.msra.mxu0 %v1871_v9  ;;  %1746 = vmatprep.subr.bf16.mxu1 %v1745_v10  ;;  %v1889_v9 = vpack.c.bf16 %v591_v14, %v585_v4  ;;  %v651_v10 = vrot.slane %v2271_v2, %v650_v3  ;;  %v436_v3 = vld [vmem:[#allocation5 + $0xb90] sm:$0xff]  ;;  %v626_v14 = vld [vmem:[#allocation5 + $0x1180] sm:$0xff] }
 0x1ed   :  { %1874 = vmatprep.subr.bf16.mxu0 %v1873_v11  ;;  %v394_v11 = vld [vmem:[#allocation5 + $0xa40] sm:$0xff]  ;;  %v741_v16 = vadd.f32 %v2248_v44, %v647_v8  ;;  %v747_v33 = vadd.f32 %v2252_v55, %v647_v8  ;;  %v425_v55 = vld [vmem:[#allocation5 + $0xb38] sm:$0xff]  ;;  %v620_v4 = vld [vmem:[#allocation5 + $0x1150] sm:$0xff] }
 0x1ee   :  { %v743_v21 = vadd.f32 %v2250_v48, %v651_v10  ;;  %v1763_v28 = vpack.c.bf16 %v400_v12, %v394_v11  ;;  %v749_v44 = vadd.f32 %v2254_v56, %v651_v10  ;;  %v1769_v47 = vpack.c.bf16 %v425_v55, %v419_v42  ;;  %v639_v8 = vld [vmem:[#allocation5 + $0x11e8] sm:$0xff] }
 0x1ef   :  { %v1903_v10 = vpack.c.bf16 %v626_v14, %v620_v4 }
 0x1f3   :  { %1748 = vmatpush1.bf16.xpose.msra.mxu1 %v1747_v23  ;;  %v597_v23 = vld [vmem:[#allocation5 + $0x1098] sm:$0xff] }
 0x1f4   :  { %1876 = vmatpush1.bf16.xpose.msra.mxu0 %v1875_v24  ;;  %1750 = vmatprep.subr.bf16.mxu1 %v1749_v25  ;;  %v603_v24 = vld [vmem:[#allocation5 + $0x10c8] sm:$0xff] }
 0x1f5   :  { %1878 = vmatprep.subr.bf16.mxu0 %v1877_v27  ;;  %v1893_v34 = vpack.c.bf16 %v603_v24, %v597_v23  ;;  %v1907_v23 = vpack.c.bf16 %v638_v18, %v632_v17 }
 0x1fb   :  { %1752 = vmatpush1.bf16.xpose.msra.mxu1 %v1751_v37 }
 0x1fc   :  { %1880 = vmatpush1.bf16.xpose.msra.mxu0 %v1879_v38  ;;  %1754 = vmatprep.subr.bf16.mxu1 %v1753_v39  ;;  %v406_v38 = vld [vmem:[#allocation5 + $0xaa0] sm:$0xff]  ;;  %v412_v39 = vld [vmem:[#allocation5 + $0xad0] sm:$0xff] }
 0x1fd   :  { %1882 = vmatprep.subr.bf16.mxu0 %v1881_v40  ;;  %v596_v40 = vld [vmem:[#allocation5 + $0x1090] sm:$0xff]  ;;  %v1767_v56 = vpack.c.bf16 %v412_v39, %v406_v38  ;;  %v478_v39 = vld [vmem:[#allocation5 + $0xce0] sm:$0xff] }
 0x1fe   :  { %v1895_v46 = vpack.c.bf16 %v602_v41, %v596_v40  ;;  %v491_v40 = vld [vmem:[#allocation5 + $0xd48] sm:$0xff]  ;;  %v497_v41 = vld [vmem:[#allocation5 + $0xd78] sm:$0xff] }
 0x1ff   :  { %v1921_v55 = vpack.c.bf16 %v497_v41, %v491_v40  ;;  %v611_v40 = vld [vmem:[#allocation5 + $0x1108] sm:$0xff]  ;;  %v617_v41 = vld [vmem:[#allocation5 + $0x1138] sm:$0xff] }
 0x203   :  { %1756 = vmatpush1.bf16.xpose.msra.mxu1 %v1755_v52  ;;  %v608_v52 = vld [vmem:[#allocation5 + $0x10f0] sm:$0xff] }
 0x204   :  { %1884 = vmatpush1.bf16.xpose.msra.mxu0 %v1883_v53  ;;  %1758 = vmatprep.subr.bf16.mxu1 %v1757_v54  ;;  %v614_v53 = vld [vmem:[#allocation5 + $0x1120] sm:$0xff]  ;;  %v431_v54 = vld [vmem:[#allocation5 + $0xb68] sm:$0xff] }
 0x205   :  { %1886 = vmatprep.subr.bf16.mxu0 %v1885_v58  ;;  %v437_v58 = vld [vmem:[#allocation5 + $0xb98] sm:$0xff]  ;;  %v1899_v62 = vpack.c.bf16 %v614_v53, %v608_v52  ;;  %v1929_v53 = vpack.c.bf16 %v521_v51, %v515_v50  ;;  %v635_v50 = vld [vmem:[#allocation5 + $0x11c8] sm:$0xff] }
 0x206   :  { %v1773_v63 = vpack.c.bf16 %v437_v58, %v431_v54  ;;  %v514_v54 = vld [vmem:[#allocation5 + $0xe00] sm:$0xff]  ;;  %v520_v58 = vld [vmem:[#allocation5 + $0xe30] sm:$0xff]  ;;  %v641_v51 = vld [vmem:[#allocation5 + $0x11f8] sm:$0xff] }
 0x20b   :  { %1760 = vmatpush1.bf16.xpose.msra.mxu1 %v1759_v15  ;;  %v443_v15 = vld [vmem:[#allocation5 + $0xbc8] sm:$0xff] }
 0x20c   :  { %1888 = vmatpush1.bf16.xpose.msra.mxu0 %v1887_v6  ;;  %1762 = vmatprep.subr.bf16.mxu1 %v1761_v7  ;;  %v449_v6 = vld [vmem:[#allocation5 + $0xbf8] sm:$0xff] }
 0x20d   :  { %1890 = vmatprep.subr.bf16.mxu0 %v1889_v9  ;;  %v633_v7 = vld [vmem:[#allocation5 + $0x11b8] sm:$0xff]  ;;  %v1775_v9 = vpack.c.bf16 %v436_v3, %v430_v1  ;;  %v1777_v11 = vpack.c.bf16 %v449_v6, %v443_v15  ;;  %v539_v1 = vld [vmem:[#allocation5 + $0xec8] sm:$0xff]  ;;  %v538_v15 = vld [vmem:[#allocation5 + $0xec0] sm:$0xff] }
 0x20e   :  { %v894_v22 = vpop.f32.mrb[0].mxu0  ;;  %v1905_v12 = vpack.c.bf16 %v639_v8, %v633_v7  ;;  %v545_v3 = vld [vmem:[#allocation5 + $0xef8] sm:$0xff]  ;;  %v544_v6 = vld [vmem:[#allocation5 + $0xef0] sm:$0xff]  ;;  %v551_v7 = vld [vmem:[#allocation5 + $0xf28] sm:$0xff] }
 0x20f   :  { %v2006_v25 = vadd.f32 %v894_v22, %v741_v16  ;;  %v896_v27 = vpop.f32.mrb[1].mxu0  ;;  %v448_v16 = vld [vmem:[#allocation5 + $0xbf0] sm:$0xff]  ;;  %v1937_v14 = vpack.c.bf16 %v545_v3, %v539_v1  ;;  %v557_v8 = vld [vmem:[#allocation5 + $0xf58] sm:$0xff] }
 0x210   :  { %v2008_v29 = vadd.f32 %v896_v27, %v743_v21  ;;  %v461_v21 = vld [vmem:[#allocation5 + $0xc58] sm:$0xff]  ;;  %v1779_v22 = vpack.c.bf16 %v448_v16, %v442_v13  ;;  %v460_v27 = vld [vmem:[#allocation5 + $0xc50] sm:$0xff]  ;;  %v563_v13 = vld [vmem:[#allocation5 + $0xf88] sm:$0xff] }
 0x211   :  { %1367 = vst [vmem:[#allocation8] sm:$0xff] %v2006_v25  ;;  %v1909_v24 = vpack.c.bf16 %v461_v21, %v455_v19  ;;  %v454_v25 = vld [vmem:[#allocation5 + $0xc20] sm:$0xff]  ;;  %v569_v16 = vld [vmem:[#allocation5 + $0xfb8] sm:$0xff]  ;;  %v568_v21 = vld [vmem:[#allocation5 + $0xfb0] sm:$0xff] }
 0x212   :  { %1368 = vst [vmem:[#allocation8 + $0x8] sm:$0xff] %v2008_v29  ;;  %v900_v35 = vpop.f32.mrb[2].mxu0  ;;  %v473_v29 = vld [vmem:[#allocation5 + $0xcb8] sm:$0xff]  ;;  %v1945_v18 = vpack.c.bf16 %v569_v16, %v563_v13  ;;  %v562_v19 = vld [vmem:[#allocation5 + $0xf80] sm:$0xff] }
 0x213   :  { %v2010_v36 = vadd.f32 %v900_v35, %v747_v33  ;;  %v902_v37 = vpop.f32.mrb[3].mxu0  ;;  %1764 = vmatpush1.bf16.xpose.msra.mxu1 %v1763_v28  ;;  %v467_v28 = vld [vmem:[#allocation5 + $0xc88] sm:$0xff]  ;;  %v2280_v33 = vld [vmem:[#allocation2 + $0x20] sm:$0xff]  ;;  %v472_v35 = vld [vmem:[#allocation5 + $0xcb0] sm:$0xff] }
 0x214   :  { %v2012_v48 = vadd.f32 %v902_v37, %v749_v44  ;;  %1892 = vmatpush1.bf16.xpose.msra.mxu0 %v1891_v31  ;;  %1766 = vmatprep.subr.bf16.mxu1 %v1765_v32  ;;  %v1911_v31 = vpack.c.bf16 %v460_v27, %v454_v25  ;;  %v1913_v32 = vpack.c.bf16 %v473_v29, %v467_v28  ;;  %v466_v44 = vld [vmem:[#allocation5 + $0xc80] sm:$0xff]  ;;  %v485_v37 = vld [vmem:[#allocation5 + $0xd18] sm:$0xff]  ;;  %v580_v28 = vld [vmem:[#allocation5 + $0x1010] sm:$0xff] }
 0x215   :  { %1373 = vst [vmem:[#allocation8 + $0x30] sm:$0xff] %v2010_v36  ;;  %1894 = vmatprep.subr.bf16.mxu0 %v1893_v34  ;;  %v2056_v34 = vld [vmem:[#allocation2 + $0x58] sm:$0xff]  ;;  %v479_v36 = vld [vmem:[#allocation5 + $0xce8] sm:$0xff]  ;;  %v1915_v38 = vpack.c.bf16 %v472_v35, %v466_v44  ;;  %v574_v27 = vld [vmem:[#allocation5 + $0xfe0] sm:$0xff] }
 0x216   :  { %1374 = vst [vmem:[#allocation8 + $0x38] sm:$0xff] %v2012_v48  ;;  %v2285_v48 = vld [vmem:[#allocation2 + $0x50] sm:$0xff]  ;;  %v587_v29 = vld [vmem:[#allocation5 + $0x1048] sm:$0xff]  ;;  %v586_v44 = vld [vmem:[#allocation5 + $0x1040] sm:$0xff] }
 0x217   :  { %v592_v35 = vld [vmem:[#allocation5 + $0x1070] sm:$0xff] }
 0x21b   :  { %1768 = vmatpush1.bf16.xpose.msra.mxu1 %v1767_v56  ;;  %v509_v56 = vld [vmem:[#allocation5 + $0xdd8] sm:$0xff] }
 0x21c   :  { %1896 = vmatpush1.bf16.xpose.msra.mxu0 %v1895_v46  ;;  %1770 = vmatprep.subr.bf16.mxu1 %v1769_v47  ;;  %v502_v47 = vld [vmem:[#allocation5 + $0xda0] sm:$0xff] }
 0x21d   :  { %1898 = vmatprep.subr.bf16.mxu0 %v1897_v49  ;;  %v508_v49 = vld [vmem:[#allocation5 + $0xdd0] sm:$0xff] }
 0x21e   :  { %v1927_v52 = vpack.c.bf16 %v508_v49, %v502_v47  ;;  %v622_v47 = vld [vmem:[#allocation5 + $0x1160] sm:$0xff]  ;;  %v628_v49 = vld [vmem:[#allocation5 + $0x1190] sm:$0xff] }
 0x223   :  { %1772 = vmatpush1.bf16.xpose.msra.mxu1 %v1771_v61  ;;  %v1931_v61 = vpack.c.bf16 %v520_v58, %v514_v54  ;;  %v634_v54 = vld [vmem:[#allocation5 + $0x11c0] sm:$0xff]  ;;  %v640_v58 = vld [vmem:[#allocation5 + $0x11f0] sm:$0xff] }
 0x224   :  { %1900 = vmatpush1.bf16.xpose.msra.mxu0 %v1899_v62  ;;  %1774 = vmatprep.subr.bf16.mxu1 %v1773_v63  ;;  %v1933_v62 = vpack.c.bf16 %v533_v60, %v527_v59  ;;  %v526_v63 = vld [vmem:[#allocation5 + $0xe60] sm:$0xff]  ;;  %v1971_v59 = vpack.c.bf16 %v640_v58, %v634_v54  ;;  %v654_v60 = vsub.s32 2, %v2268_v20 }
 0x225   :  { %1902 = vmatprep.subr.bf16.mxu0 %v1901_v0  ;;  %v532_v0 = vld [vmem:[#allocation5 + $0xe90] sm:$0xff] }
 0x226   :  { %v1935_v4 = vpack.c.bf16 %v532_v0, %v526_v63 }
 0x22b   :  { %1776 = vmatpush1.bf16.xpose.msra.mxu1 %v1775_v9  ;;  %v1939_v9 = vpack.c.bf16 %v544_v6, %v538_v15 }
 0x22c   :  { %1904 = vmatpush1.bf16.xpose.msra.mxu0 %v1903_v10  ;;  %1778 = vmatprep.subr.bf16.mxu1 %v1777_v11  ;;  %v1941_v10 = vpack.c.bf16 %v557_v8, %v551_v7  ;;  %v550_v11 = vld [vmem:[#allocation5 + $0xf20] sm:$0xff]  ;;  %v662_v8 = vsub.s32 4, %v2268_v20 }
 0x22d   :  { %1906 = vmatprep.subr.bf16.mxu0 %v1905_v12  ;;  %v556_v12 = vld [vmem:[#allocation5 + $0xf50] sm:$0xff] }
 0x22e   :  { %v1943_v17 = vpack.c.bf16 %v556_v12, %v550_v11 }
 0x233   :  { %1780 = vmatpush1.bf16.xpose.msra.mxu1 %v1779_v22  ;;  %v575_v22 = vld [vmem:[#allocation5 + $0xfe8] sm:$0xff] }
 0x234   :  { %1908 = vmatpush1.bf16.xpose.msra.mxu0 %v1907_v23  ;;  %1973 = vmatprep.subr.bf16.mxu1 %v1909_v24  ;;  %v581_v23 = vld [vmem:[#allocation5 + $0x1018] sm:$0xff] }
 0x235   :  { %1910 = vmatprep.subr.bf16.mxu0 %v1909_v24  ;;  %v1947_v24 = vpack.c.bf16 %v568_v21, %v562_v19  ;;  %v1949_v25 = vpack.c.bf16 %v581_v23, %v575_v22 }
 0x23a   :  { %1124 = vmatmul.mubr.f32.vlgmr.msra.gmra.mrb[4].mxu1 %v2280_v33 }
 0x23b   :  { %1278 = vmatmul.mubr.f32.vlgmr.msra.gmra.mrb[4].mxu0 %v2256_v57  ;;  %1989 = vmatpush1.bf16.xpose.msra.mxu1 %v1911_v31  ;;  %v1917_v57 = vpack.c.bf16 %v485_v37, %v479_v36  ;;  %v599_v36 = vld [vmem:[#allocation5 + $0x10a8] sm:$0xff]  ;;  %v605_v37 = vld [vmem:[#allocation5 + $0x10d8] sm:$0xff] }
 0x23c   :  { %1912 = vmatpush1.bf16.xpose.msra.mxu0 %v1911_v31  ;;  %1129 = vmatprep.mubr.f32.mxu1 %v2056_v34  ;;  %v593_v31 = vld [vmem:[#allocation5 + $0x1078] sm:$0xff] }
 0x23d   :  { %1283 = vmatprep.mubr.f32.mxu0 %v2259_v26  ;;  %1914 = vmatprep.subr.bf16.mxu0 %v1913_v32  ;;  %v484_v26 = vld [vmem:[#allocation5 + $0xd10] sm:$0xff] }
 0x23e   :  { %1130 = vmatmul.mubr.f32.gmra.mrb[6].mxu1 %v2285_v48  ;;  %1974 = vmatprep.subr.bf16.mxu1 %v1913_v32  ;;  %v1919_v42 = vpack.c.bf16 %v484_v26, %v478_v39  ;;  %v1951_v32 = vpack.c.bf16 %v580_v28, %v574_v27  ;;  %v598_v39 = vld [vmem:[#allocation5 + $0x10a0] sm:$0xff]  ;;  %v604_v26 = vld [vmem:[#allocation5 + $0x10d0] sm:$0xff] }
 0x23f   :  { %1284 = vmatmul.mubr.f32.gmra.mrb[6].mxu0 %v2262_v30  ;;  %1360 = vmatprep.mubr.f32.mxu1 %v2056_v34  ;;  %v496_v30 = vld [vmem:[#allocation5 + $0xd70] sm:$0xff]  ;;  %v1953_v34 = vpack.c.bf16 %v593_v31, %v587_v29 }
 0x240   :  { %1354 = vmatprep.mubr.f32.mxu0 %v2265_v5  ;;  %v1923_v46 = vpack.c.bf16 %v496_v30, %v490_v43  ;;  %v1925_v5 = vpack.c.bf16 %v509_v56, %v503_v45  ;;  %v610_v43 = vld [vmem:[#allocation5 + $0x1100] sm:$0xff]  ;;  %v616_v30 = vld [vmem:[#allocation5 + $0x1130] sm:$0xff]  ;;  %v623_v45 = vld [vmem:[#allocation5 + $0x1168] sm:$0xff] }
 0x241   :  { %v629_v56 = vld [vmem:[#allocation5 + $0x1198] sm:$0xff] }
 0x243   :  { %1990 = vmatpush1.bf16.xpose.msra.mxu1 %v1915_v38 }
 0x244   :  { %1916 = vmatpush1.bf16.xpose.msra.mxu0 %v1915_v38  ;;  %1975 = vmatprep.subr.bf16.mxu1 %v1917_v57  ;;  %v1955_v38 = vpack.c.bf16 %v592_v35, %v586_v44 }
 0x245   :  { %1918 = vmatprep.subr.bf16.mxu0 %v1917_v57  ;;  %v1957_v57 = vpack.c.bf16 %v605_v37, %v599_v36 }
 0x24b   :  { %1991 = vmatpush1.bf16.xpose.msra.mxu1 %v1919_v42 }
 0x24c   :  { %1920 = vmatpush1.bf16.xpose.msra.mxu0 %v1919_v42  ;;  %1976 = vmatprep.subr.bf16.mxu1 %v1921_v55  ;;  %v1959_v42 = vpack.c.bf16 %v604_v26, %v598_v39 }
 0x24d   :  { %1922 = vmatprep.subr.bf16.mxu0 %v1921_v55  ;;  %v1961_v55 = vpack.c.bf16 %v617_v41, %v611_v40 }
 0x253   :  { %1992 = vmatpush1.bf16.xpose.msra.mxu1 %v1923_v46 }
 0x254   :  { %1924 = vmatpush1.bf16.xpose.msra.mxu0 %v1923_v46  ;;  %1977 = vmatprep.subr.bf16.mxu1 %v1925_v5  ;;  %v1963_v46 = vpack.c.bf16 %v616_v30, %v610_v43 }
 0x255   :  { %1926 = vmatprep.subr.bf16.mxu0 %v1925_v5  ;;  %v1965_v5 = vpack.c.bf16 %v629_v56, %v623_v45 }
 0x25b   :  { %1993 = vmatpush1.bf16.xpose.msra.mxu1 %v1927_v52 }
 0x25c   :  { %1928 = vmatpush1.bf16.xpose.msra.mxu0 %v1927_v52  ;;  %1978 = vmatprep.subr.bf16.mxu1 %v1929_v53  ;;  %v1967_v52 = vpack.c.bf16 %v628_v49, %v622_v47 }
 0x25d   :  { %1930 = vmatprep.subr.bf16.mxu0 %v1929_v53  ;;  %v1969_v53 = vpack.c.bf16 %v641_v51, %v635_v50 }
 0x263   :  { %1994 = vmatpush1.bf16.xpose.msra.mxu1 %v1931_v61 }
 0x264   :  { %1932 = vmatpush1.bf16.xpose.msra.mxu0 %v1931_v61  ;;  %1979 = vmatprep.subr.bf16.mxu1 %v1933_v62  ;;  %v658_v61 = vsub.s32 3, %v2268_v20 }
 0x265   :  { %1934 = vmatprep.subr.bf16.mxu0 %v1933_v62  ;;  %v655_v62 = vrot.slane %v2271_v2, %v654_v60 }
 0x266   :  { %v659_v63 = vrot.slane %v2271_v2, %v658_v61 }
 0x26b   :  { %1995 = vmatpush1.bf16.xpose.msra.mxu1 %v1935_v4 }
 0x26c   :  { %1936 = vmatpush1.bf16.xpose.msra.mxu0 %v1935_v4  ;;  %1980 = vmatprep.subr.bf16.mxu1 %v1937_v14 }
 0x26d   :  { %1938 = vmatprep.subr.bf16.mxu0 %v1937_v14 }
 0x273   :  { %1996 = vmatpush1.bf16.xpose.msra.mxu1 %v1939_v9 }
 0x274   :  { %1940 = vmatpush1.bf16.xpose.msra.mxu0 %v1939_v9  ;;  %1981 = vmatprep.subr.bf16.mxu1 %v1941_v10  ;;  %v666_v9 = vsub.s32 5, %v2268_v20 }
 0x275   :  { %1942 = vmatprep.subr.bf16.mxu0 %v1941_v10  ;;  %v663_v10 = vrot.slane %v2271_v2, %v662_v8 }
 0x276   :  { %v667_v11 = vrot.slane %v2271_v2, %v666_v9 }
 0x27b   :  { %1997 = vmatpush1.bf16.xpose.msra.mxu1 %v1943_v17 }
 0x27c   :  { %1944 = vmatpush1.bf16.xpose.msra.mxu0 %v1943_v17  ;;  %1982 = vmatprep.subr.bf16.mxu1 %v1945_v18 }
 0x27d   :  { %1946 = vmatprep.subr.bf16.mxu0 %v1945_v18 }
 0x283   :  { %1998 = vmatpush1.bf16.xpose.msra.mxu1 %v1947_v24 }
 0x284   :  { %1948 = vmatpush1.bf16.xpose.msra.mxu0 %v1947_v24  ;;  %1983 = vmatprep.subr.bf16.mxu1 %v1949_v25 }
 0x285   :  { %1950 = vmatprep.subr.bf16.mxu0 %v1949_v25 }
 0x28b   :  { %1999 = vmatpush1.bf16.xpose.msra.mxu1 %v1951_v32 }
 0x28c   :  { %1952 = vmatpush1.bf16.xpose.msra.mxu0 %v1951_v32  ;;  %1984 = vmatprep.subr.bf16.mxu1 %v1953_v34 }
 0x28d   :  { %1954 = vmatprep.subr.bf16.mxu0 %v1953_v34 }
 0x293   :  { %2000 = vmatpush1.bf16.xpose.msra.mxu1 %v1955_v38 }
 0x294   :  { %1956 = vmatpush1.bf16.xpose.msra.mxu0 %v1955_v38  ;;  %1985 = vmatprep.subr.bf16.mxu1 %v1957_v57 }
 0x295   :  { %1958 = vmatprep.subr.bf16.mxu0 %v1957_v57 }
 0x29b   :  { %2001 = vmatpush1.bf16.xpose.msra.mxu1 %v1959_v42 }
 0x29c   :  { %1960 = vmatpush1.bf16.xpose.msra.mxu0 %v1959_v42  ;;  %1986 = vmatprep.subr.bf16.mxu1 %v1961_v55 }
 0x29d   :  { %1962 = vmatprep.subr.bf16.mxu0 %v1961_v55 }
 0x2a3   :  { %2002 = vmatpush1.bf16.xpose.msra.mxu1 %v1963_v46 }
 0x2a4   :  { %1964 = vmatpush1.bf16.xpose.msra.mxu0 %v1963_v46  ;;  %1987 = vmatprep.subr.bf16.mxu1 %v1965_v5 }
 0x2a5   :  { %1966 = vmatprep.subr.bf16.mxu0 %v1965_v5 }
 0x2ab   :  { %2003 = vmatpush1.bf16.xpose.msra.mxu1 %v1967_v52 }
 0x2ac   :  { %1968 = vmatpush1.bf16.xpose.msra.mxu0 %v1967_v52  ;;  %1988 = vmatprep.subr.bf16.mxu1 %v1969_v53 }
 0x2ad   :  { %1970 = vmatprep.subr.bf16.mxu0 %v1969_v53 }
 0x2b3   :  { %2004 = vmatpush1.bf16.xpose.msra.mxu1 %v1971_v59 }
 0x2b4   :  { %1972 = vmatpush1.bf16.xpose.msra.mxu0 %v1971_v59 }
 0x2ba   :  { %1361 = vmatmul.mubr.f32.vlgmr.msra.gmra.mrb[8].mxu1 %v2285_v48 }
 0x2bb   :  { %1355 = vmatmul.mubr.f32.vlgmr.msra.gmra.mrb[4].mxu0 %v2280_v33 }
 0x30d   :  { %v1125_v0 = vpop.f32.mrb[4].mxu1 }
 0x30e   :  { %v2013_v1 = vadd.f32 %v1125_v0, %v655_v62  ;;  %v1127_v3 = vpop.f32.mrb[5].mxu1 }
 0x30f   :  { %v2014_v4 = vadd.f32 %v1127_v3, %v659_v63 }
 0x310   :  { %1369 = vst [vmem:[#allocation8 + $0x10] sm:$0xff] %v2013_v1 }
 0x311   :  { %1370 = vst [vmem:[#allocation8 + $0x18] sm:$0xff] %v2014_v4  ;;  %v1131_v14 = vpop.f32.mrb[6].mxu1 }
 0x312   :  { %v2015_v15 = vadd.f32 %v1131_v14, %v655_v62  ;;  %v1285_v6 = vpop.f32.mrb[6].mxu0  ;;  %v1133_v48 = vpop.f32.mrb[7].mxu1 }
 0x313   :  { %v2016_v7 = vadd.f32 %v1133_v48, %v659_v63  ;;  %v1287_v33 = vpop.f32.mrb[7].mxu0  ;;  %v2019_v12 = vadd.f32 %v1285_v6, %v663_v10 }
 0x314   :  { %1375 = vst [vmem:[#allocation8 + $0x40] sm:$0xff] %v2015_v15  ;;  %v2021_v13 = vadd.f32 %v1287_v33, %v667_v11 }
 0x315   :  { %1376 = vst [vmem:[#allocation8 + $0x48] sm:$0xff] %v2016_v7 }
 0x38d   :  { %v1362_v16 = vpop.f32.mrb[8].mxu1 }
 0x38e   :  { %v1356_v17 = vpop.f32.mrb[4].mxu0  ;;  %v2020_v18 = vadd.f32 %v2019_v12, %v1362_v16  ;;  %v1364_v19 = vpop.f32.mrb[9].mxu1 }
 0x38f   :  { %v2017_v21 = vadd.f32 %v1356_v17, %v663_v10  ;;  %v1358_v22 = vpop.f32.mrb[5].mxu0  ;;  %v2022_v23 = vadd.f32 %v2021_v13, %v1364_v19 }
 0x390   :  { %1377 = vst [vmem:[#allocation8 + $0x50] sm:$0xff] %v2020_v18  ;;  %v2018_v24 = vadd.f32 %v1358_v22, %v667_v11 }
 0x391   :  { %1371 = vst [vmem:[#allocation8 + $0x20] sm:$0xff] %v2017_v21  ;;  %1378 = vst [vmem:[#allocation8 + $0x58] sm:$0xff] %v2022_v23 }
 0x392   :  { %1372 = vst [vmem:[#allocation8 + $0x28] sm:$0xff] %v2018_v24 }
 0x393   :  { %2135 = shalt.err (!%p2132_p0)
}
 0x394   :  { %s2136_s27 = scalar_lea.hbm %s2318_s3, 1536 }
 0x395   :  { %p2137_p1 = scmp.ne.s32.totalorder %s2318_s3, %s2136_s27  ;;  %p2140_p2 = scmp.lt.u32.totalorder %s2136_s27, %s2318_s3 }
 0x397   :  { %p2142_p3 = pnand %p2140_p2, %p2137_p1 }
 0x399   :  { %2145 = shalt.err (!%p2142_p3)
}
 0x39a   :  { %1390 = dma.vmem_to_hbm [thread:$0]  %s1385_s21, 1536, %s2318_s3, [#allocation4], %s2154_s24, %s2154_s24, %s2155_s25  }
 0x39b   :  { %2150 = dma.done.wait [#allocation4], 1536  }
 0x39c   :  { %2151 = vsyncadd [#allocation4], 4294965760 }
 0x39d   :  { %1394 = vsyncpa [#allocation3], 1 }
 0x39e   :  { %1395 = vsyncpa [#allocation6], 1 }
 0x39f   :  { %1396 = vsyncpa [#allocation4], 1 }

</bundles_post_ra>
